<compile_context>
chip_gen: v6e
topology: v6e:2x2x1
jax: 0.10.0
libtpu: 0.0.40
codegen_flags: <defaults>
</compile_context>

<pallas_src>
import jax
import jax.numpy as jnp
from jax import lax
from jax.experimental import pallas as pl
from jax.experimental.pallas import tpu as pltpu


def encoder_kernel(ids_ref, len_ref, emb_ref,
                   wih_f_ref, whh_f_ref, bih_f_ref, bhh_f_ref,
                   wih_b_ref, whh_b_ref, bih_b_ref, bhh_b_ref,
                   wfc_ref, bfc_ref,
                   out_f_ref, out_b_ref, hid_ref,
                   xf_ref, xb_ref):
    TB = ids_ref.shape[0]          # T * B (time-major rows: row = t*B + b)
    V = emb_ref.shape[0]
    H = whh_f_ref.shape[0]
    B = len_ref.shape[0]
    T = TB // B

    # ---- Embedding lookup as a one-hot matmul (batch+time fused into the M dim) ----
    ids = ids_ref[...]                                              # (T*B, 1) int32
    onehot = (ids == lax.broadcasted_iota(jnp.int32, (TB, V), 1)).astype(jnp.float32)
    emb = jnp.dot(onehot, emb_ref[...], preferred_element_type=jnp.float32)  # (T*B, E)
    # dropout: identity (inference mode).

    # ---- GRU input projections for both directions: one big matmul each, done once ----
    xf_ref[...] = jnp.dot(emb, wih_f_ref[...],
                          preferred_element_type=jnp.float32) + bih_f_ref[...]
    xb_ref[...] = jnp.dot(emb, wih_b_ref[...],
                          preferred_element_type=jnp.float32) + bih_b_ref[...]

    lengths = len_ref[...]                                          # (B, 1) int32
    # Hoist loop-invariant weight/bias loads out of the recurrence loop.
    whh_f = whh_f_ref[...]
    bhh_f = bhh_f_ref[...]
    whh_b = whh_b_ref[...]
    bhh_b = bhh_b_ref[...]

    def gru_cell(h, gi, whh, bhh):
        gh = jnp.dot(h, whh, preferred_element_type=jnp.float32) + bhh
        r = jax.nn.sigmoid(gi[:, :H] + gh[:, :H])
        z = jax.nn.sigmoid(gi[:, H:2 * H] + gh[:, H:2 * H])
        n = jnp.tanh(gi[:, 2 * H:] + r * gh[:, 2 * H:])
        return (1.0 - z) * n + z * h

    # ---- Both directions in one loop: fwd at t=i, bwd at t=T-1-i (independent chains) ----
    def body(i, carry):
        h_f, h_b = carry
        t_b = T - 1 - i
        rows_f = pl.ds(pl.multiple_of(i * B, B), B)
        rows_b = pl.ds(pl.multiple_of(t_b * B, B), B)

        hf_new = gru_cell(h_f, xf_ref[rows_f, :], whh_f, bhh_f)
        hb_new = gru_cell(h_b, xb_ref[rows_b, :], whh_b, bhh_b)

        valid_f = i < lengths                                       # (B, 1) bool
        valid_b = t_b < lengths
        out_f_ref[rows_f, :] = jnp.where(valid_f, hf_new, 0.0)      # pad_packed -> zeros
        out_b_ref[rows_b, :] = jnp.where(valid_b, hb_new, 0.0)
        # Freeze fwd hidden at t = len-1; bwd hidden stays 0 until t < len (packed semantics).
        return (jnp.where(valid_f, hf_new, h_f),
                jnp.where(valid_b, hb_new, h_b))

    h0 = jnp.zeros((B, H), jnp.float32)
    h_f, h_b = lax.fori_loop(0, T, body, (h0, h0), unroll=True)

    # ---- hid = tanh(fc(cat(h_f, h_b))) ----
    hcat = jnp.concatenate([h_f, h_b], axis=1)                      # (B, 2H)
    hid_ref[...] = jnp.tanh(
        jnp.dot(hcat, wfc_ref[...], preferred_element_type=jnp.float32) + bfc_ref[...])


def encoder_forward(ids, lengths, p):
    """ids: (B, T) int32 token ids; lengths: (B,) int32 valid lengths (max == T).
    p: PyTorch-layout params (embedding (V,E); w_ih_* (3H,E); w_hh_* (3H,H);
    b_ih_*/b_hh_* (3H,); w_fc (D, 2H); b_fc (D,))."""
    B, T = ids.shape
    V, E = p["embedding"].shape
    H = p["w_hh_f"].shape[1]
    D = p["w_fc"].shape[0]
    TB = T * B

    # Time-major flattened token ids (row = t*B + b) and 2-D lengths.
    ids_tm = jnp.transpose(ids).reshape(TB, 1).astype(jnp.int32)
    len2d = lengths.reshape(B, 1).astype(jnp.int32)

    # Pre-transpose weights to (in, out) so the kernel does plain x @ W.
    args = (
        ids_tm, len2d, p["embedding"],
        jnp.transpose(p["w_ih_f"]), jnp.transpose(p["w_hh_f"]),
        p["b_ih_f"].reshape(1, 3 * H), p["b_hh_f"].reshape(1, 3 * H),
        jnp.transpose(p["w_ih_b"]), jnp.transpose(p["w_hh_b"]),
        p["b_ih_b"].reshape(1, 3 * H), p["b_hh_b"].reshape(1, 3 * H),
        jnp.transpose(p["w_fc"]), p["b_fc"].reshape(1, D),
    )

    def full(shape):
        nd = len(shape)
        return pl.BlockSpec(shape, lambda i, _nd=nd: (0,) * _nd)

    grid_spec = pltpu.PrefetchScalarGridSpec(
        num_scalar_prefetch=0,
        grid=(1,),                                   # single step: batch fused into matmul M
        in_specs=[full(a.shape) for a in args],
        out_specs=[full((TB, H)), full((TB, H)), full((B, D))],
        scratch_shapes=[pltpu.VMEM((TB, 3 * H), jnp.float32),   # fwd input projections
                        pltpu.VMEM((TB, 3 * H), jnp.float32)],  # bwd input projections
    )
    out_shape = (
        jax.ShapeDtypeStruct((TB, H), jnp.float32),
        jax.ShapeDtypeStruct((TB, H), jnp.float32),
        jax.ShapeDtypeStruct((B, D), jnp.float32),
    )

    out_f, out_b, hid = pl.pallas_call(
        encoder_kernel,
        grid_spec=grid_spec,
        out_shape=out_shape,
        compiler_params=pltpu.CompilerParams(dimension_semantics=("arbitrary",)),
    )(*args)

    # Wrapper-side layout plumbing back to the PyTorch shapes.
    out = jnp.concatenate([out_f.reshape(T, B, H), out_b.reshape(T, B, H)], axis=-1)
    out = jnp.transpose(out, (1, 0, 2))              # (B, T, 2H)
    return out, hid[None]                            # (1, B, D)


def reference_forward(ids, lengths, p):
    """Pure-JAX reference mirroring the PyTorch Encoder (dropout in eval mode)."""
    HP = lax.Precision.HIGHEST
    emb = jnp.take(p["embedding"], ids, axis=0)      # (B, T, E)
    B, T, _ = emb.shape
    H = p["w_hh_f"].shape[1]

    def run_dir(wih, whh, bih, bhh, reverse):
        h = jnp.zeros((B, H), jnp.float32)
        outs = [None] * T
        order = range(T - 1, -1, -1) if reverse else range(T)
        for t in order:
            xt = emb[:, t, :]
            gi = jnp.dot(xt, wih.T, precision=HP) + bih
            gh = jnp.dot(h, whh.T, precision=HP) + bhh
            r = jax.nn.sigmoid(gi[:, :H] + gh[:, :H])
            z = jax.nn.sigmoid(gi[:, H:2 * H] + gh[:, H:2 * H])
            n = jnp.tanh(gi[:, 2 * H:] + r * gh[:, 2 * H:])
            h_new = (1.0 - z) * n + z * h
            valid = (t < lengths)[:, None]
            h = jnp.where(valid, h_new, h)
            outs[t] = jnp.where(valid, h_new, 0.0)
        return jnp.stack(outs, axis=1), h

    out_f, h_f = run_dir(p["w_ih_f"], p["w_hh_f"], p["b_ih_f"], p["b_hh_f"], False)
    out_b, h_b = run_dir(p["w_ih_b"], p["w_hh_b"], p["b_ih_b"], p["b_hh_b"], True)
    out = jnp.concatenate([out_f, out_b], axis=-1)   # (B, T, 2H)
    hcat = jnp.concatenate([h_f, h_b], axis=1)
    hid = jnp.tanh(jnp.dot(hcat, p["w_fc"].T, precision=HP) + p["b_fc"])[None]
    return out, hid


if __name__ == "__main__":
    # Small shapes consistent with the module.
    V, E, H, D = 50, 32, 32, 32      # vocab, embed, enc_hidden, dec_hidden
    B, T = 8, 8

    key = jax.random.PRNGKey(0)
    ks = jax.random.split(key, 12)

    def uni(k, shape, fan):
        bound = 1.0 / jnp.sqrt(jnp.float32(fan))
        return jax.random.uniform(k, shape, jnp.float32, -bound, bound)

    params = dict(
        embedding=jax.random.normal(ks[0], (V, E), jnp.float32),
        w_ih_f=uni(ks[1], (3 * H, E), H), w_hh_f=uni(ks[2], (3 * H, H), H),
        b_ih_f=uni(ks[3], (3 * H,), H), b_hh_f=uni(ks[4], (3 * H,), H),
        w_ih_b=uni(ks[5], (3 * H, E), H), w_hh_b=uni(ks[6], (3 * H, H), H),
        b_ih_b=uni(ks[7], (3 * H,), H), b_hh_b=uni(ks[8], (3 * H,), H),
        w_fc=uni(ks[9], (D, 2 * H), 2 * H), b_fc=uni(ks[10], (D,), 2 * H),
    )

    ids = jax.random.randint(ks[11], (B, T), 0, V, jnp.int32)
    # max(lengths) == T so pad_packed output width matches the input width.
    lengths = jnp.array([8, 5, 7, 3, 8, 6, 2, 4], jnp.int32)

    out, hid = encoder_forward(ids, lengths, params)
    out = jax.block_until_ready(out)
    hid = jax.block_until_ready(hid)

    ref_out, ref_hid = reference_forward(ids, lengths, params)
    assert out.shape == (B, T, 2 * H)
    assert hid.shape == (1, B, D)
    assert jnp.allclose(out, ref_out, atol=1e-3, rtol=1e-3)
    assert jnp.allclose(hid, ref_hid, atol=1e-3, rtol=1e-3)

    print("KERNEL_OK")
</pallas_src>

<mosaic_0001>
module attributes {stable_mosaic.version = 11 : i64} {
  func.func @encoder_kernel(%arg0: i32, %arg1: memref<64x1xi32, #tpu.memory_space<vmem>>, %arg2: memref<8x1xi32, #tpu.memory_space<vmem>>, %arg3: memref<50x32xf32, #tpu.memory_space<vmem>>, %arg4: memref<32x96xf32, #tpu.memory_space<vmem>>, %arg5: memref<32x96xf32, #tpu.memory_space<vmem>>, %arg6: memref<1x96xf32, #tpu.memory_space<vmem>>, %arg7: memref<1x96xf32, #tpu.memory_space<vmem>>, %arg8: memref<32x96xf32, #tpu.memory_space<vmem>>, %arg9: memref<32x96xf32, #tpu.memory_space<vmem>>, %arg10: memref<1x96xf32, #tpu.memory_space<vmem>>, %arg11: memref<1x96xf32, #tpu.memory_space<vmem>>, %arg12: memref<64x32xf32, #tpu.memory_space<vmem>>, %arg13: memref<1x32xf32, #tpu.memory_space<vmem>>, %arg14: memref<64x32xf32, #tpu.memory_space<vmem>>, %arg15: memref<64x32xf32, #tpu.memory_space<vmem>>, %arg16: memref<8x32xf32, #tpu.memory_space<vmem>>, %arg17: memref<64x96xf32, #tpu.memory_space<vmem>>, %arg18: memref<64x96xf32, #tpu.memory_space<vmem>>) attributes {dimension_semantics = [#tpu.dimension_semantics<arbitrary>], iteration_bounds = array<i64: 1>, scalar_prefetch = 0 : i64, scratch_operands = 2 : i64, tpu.core_type = #tpu.core_type<tc>, window_params = [{pipeline_mode = #tpu.pipeline_mode<synchronous>, transform_indices = @transform_0, window_bounds = array<i64: 64, 1>}, {pipeline_mode = #tpu.pipeline_mode<synchronous>, transform_indices = @transform_1, window_bounds = array<i64: 8, 1>}, {pipeline_mode = #tpu.pipeline_mode<synchronous>, transform_indices = @transform_2, window_bounds = array<i64: 50, 32>}, {pipeline_mode = #tpu.pipeline_mode<synchronous>, transform_indices = @transform_3, window_bounds = array<i64: 32, 96>}, {pipeline_mode = #tpu.pipeline_mode<synchronous>, transform_indices = @transform_4, window_bounds = array<i64: 32, 96>}, {pipeline_mode = #tpu.pipeline_mode<synchronous>, transform_indices = @transform_5, window_bounds = array<i64: 1, 96>}, {pipeline_mode = #tpu.pipeline_mode<synchronous>, transform_indices = @transform_6, window_bounds = array<i64: 1, 96>}, {pipeline_mode = #tpu.pipeline_mode<synchronous>, transform_indices = @transform_7, window_bounds = array<i64: 32, 96>}, {pipeline_mode = #tpu.pipeline_mode<synchronous>, transform_indices = @transform_8, window_bounds = array<i64: 32, 96>}, {pipeline_mode = #tpu.pipeline_mode<synchronous>, transform_indices = @transform_9, window_bounds = array<i64: 1, 96>}, {pipeline_mode = #tpu.pipeline_mode<synchronous>, transform_indices = @transform_10, window_bounds = array<i64: 1, 96>}, {pipeline_mode = #tpu.pipeline_mode<synchronous>, transform_indices = @transform_11, window_bounds = array<i64: 64, 32>}, {pipeline_mode = #tpu.pipeline_mode<synchronous>, transform_indices = @transform_12, window_bounds = array<i64: 1, 32>}, {pipeline_mode = #tpu.pipeline_mode<synchronous>, transform_indices = @transform_13, window_bounds = array<i64: 64, 32>}, {pipeline_mode = #tpu.pipeline_mode<synchronous>, transform_indices = @transform_14, window_bounds = array<i64: 64, 32>}, {pipeline_mode = #tpu.pipeline_mode<synchronous>, transform_indices = @transform_15, window_bounds = array<i64: 8, 32>}]} {
    %c0 = arith.constant 0 : index
    %c0_0 = arith.constant 0 : index
    %0 = vector.load %arg1[%c0, %c0_0] : memref<64x1xi32, #tpu.memory_space<vmem>>, vector<64x1xi32>
    %1 = tpu.iota {dimensions = array<i32: 1>} : vector<64x50xi32>
    %2 = vector.broadcast %0 : vector<64x1xi32> to vector<64x50xi32>
    %3 = arith.cmpi eq, %2, %1 : vector<64x50xi32>
    %4 = arith.extui %3 : vector<64x50xi1> to vector<64x50xi32>
    %5 = arith.sitofp %4 : vector<64x50xi32> to vector<64x50xf32>
    %c0_1 = arith.constant 0 : index
    %c0_2 = arith.constant 0 : index
    %6 = vector.load %arg3[%c0_1, %c0_2] : memref<50x32xf32, #tpu.memory_space<vmem>>, vector<50x32xf32>
    %cst = arith.constant dense<0.000000e+00> : vector<64x32xf32>
    %7 = tpu.matmul %5, %6, %cst {dimension_numbers = #tpu.dot_dimension_numbers<[1], [0], [0], [1], [0, 0, 1, 1], [], []>} : vector<64x50xf32>, vector<50x32xf32>, vector<64x32xf32> -> vector<64x32xf32>
    %c0_3 = arith.constant 0 : index
    %c0_4 = arith.constant 0 : index
    %8 = vector.load %arg4[%c0_3, %c0_4] : memref<32x96xf32, #tpu.memory_space<vmem>>, vector<32x96xf32>
    %cst_5 = arith.constant dense<0.000000e+00> : vector<64x96xf32>
    %9 = tpu.matmul %7, %8, %cst_5 {dimension_numbers = #tpu.dot_dimension_numbers<[1], [0], [0], [1], [0, 0, 1, 1], [], []>} : vector<64x32xf32>, vector<32x96xf32>, vector<64x96xf32> -> vector<64x96xf32>
    %c0_6 = arith.constant 0 : index
    %c0_7 = arith.constant 0 : index
    %10 = vector.load %arg6[%c0_6, %c0_7] : memref<1x96xf32, #tpu.memory_space<vmem>>, vector<1x96xf32>
    %11 = vector.broadcast %10 : vector<1x96xf32> to vector<64x96xf32>
    %12 = arith.addf %9, %11 : vector<64x96xf32>
    %c0_8 = arith.constant 0 : index
    %c0_9 = arith.constant 0 : index
    %13 = vector.load %arg17[%c0_8, %c0_9] : memref<64x96xf32, #tpu.memory_space<vmem>>, vector<64x96xf32>
    tpu.vector_store %arg17[%c0_8, %c0_9], %12 {strides = array<i32>} : memref<64x96xf32, #tpu.memory_space<vmem>>, vector<64x96xf32>,
    %c0_10 = arith.constant 0 : index
    %c0_11 = arith.constant 0 : index
    %14 = vector.load %arg8[%c0_10, %c0_11] : memref<32x96xf32, #tpu.memory_space<vmem>>, vector<32x96xf32>
    %cst_12 = arith.constant dense<0.000000e+00> : vector<64x96xf32>
    %15 = tpu.matmul %7, %14, %cst_12 {dimension_numbers = #tpu.dot_dimension_numbers<[1], [0], [0], [1], [0, 0, 1, 1], [], []>} : vector<64x32xf32>, vector<32x96xf32>, vector<64x96xf32> -> vector<64x96xf32>
    %c0_13 = arith.constant 0 : index
    %c0_14 = arith.constant 0 : index
    %16 = vector.load %arg10[%c0_13, %c0_14] : memref<1x96xf32, #tpu.memory_space<vmem>>, vector<1x96xf32>
    %17 = vector.broadcast %16 : vector<1x96xf32> to vector<64x96xf32>
    %18 = arith.addf %15, %17 : vector<64x96xf32>
    %c0_15 = arith.constant 0 : index
    %c0_16 = arith.constant 0 : index
    %19 = vector.load %arg18[%c0_15, %c0_16] : memref<64x96xf32, #tpu.memory_space<vmem>>, vector<64x96xf32>
    tpu.vector_store %arg18[%c0_15, %c0_16], %18 {strides = array<i32>} : memref<64x96xf32, #tpu.memory_space<vmem>>, vector<64x96xf32>,
    %c0_17 = arith.constant 0 : index
    %c0_18 = arith.constant 0 : index
    %20 = vector.load %arg2[%c0_17, %c0_18] : memref<8x1xi32, #tpu.memory_space<vmem>>, vector<8x1xi32>
    %c0_19 = arith.constant 0 : index
    %c0_20 = arith.constant 0 : index
    %21 = vector.load %arg5[%c0_19, %c0_20] : memref<32x96xf32, #tpu.memory_space<vmem>>, vector<32x96xf32>
    %c0_21 = arith.constant 0 : index
    %c0_22 = arith.constant 0 : index
    %22 = vector.load %arg7[%c0_21, %c0_22] : memref<1x96xf32, #tpu.memory_space<vmem>>, vector<1x96xf32>
    %c0_23 = arith.constant 0 : index
    %c0_24 = arith.constant 0 : index
    %23 = vector.load %arg9[%c0_23, %c0_24] : memref<32x96xf32, #tpu.memory_space<vmem>>, vector<32x96xf32>
    %c0_25 = arith.constant 0 : index
    %c0_26 = arith.constant 0 : index
    %24 = vector.load %arg11[%c0_25, %c0_26] : memref<1x96xf32, #tpu.memory_space<vmem>>, vector<1x96xf32>
    %cst_27 = arith.constant 0.000000e+00 : f32
    %25 = vector.broadcast %cst_27 : f32 to vector<8x32xf32>
    %c0_i32 = arith.constant 0 : i32
    %c7_i32 = arith.constant 7 : i32
    %26 = arith.subi %c7_i32, %c0_i32 : i32
    %c8_i32 = arith.constant 8 : i32
    %27 = arith.muli %c0_i32, %c8_i32 : i32
    %28 = tpu.assume_multiple %27, 8 : i32
    %c8_i32_28 = arith.constant 8 : i32
    %29 = arith.muli %26, %c8_i32_28 : i32
    %30 = tpu.assume_multiple %29, 8 : i32
    %31 = arith.index_cast %28 : i32 to index
    %c0_29 = arith.constant 0 : index
    %32 = vector.load %arg17[%31, %c0_29] : memref<64x96xf32, #tpu.memory_space<vmem>>, vector<8x96xf32>
    %cst_30 = arith.constant dense<0.000000e+00> : vector<8x96xf32>
    %33 = tpu.matmul %25, %21, %cst_30 {dimension_numbers = #tpu.dot_dimension_numbers<[1], [0], [0], [1], [0, 0, 1, 1], [], []>} : vector<8x32xf32>, vector<32x96xf32>, vector<8x96xf32> -> vector<8x96xf32>
    %34 = vector.broadcast %22 : vector<1x96xf32> to vector<8x96xf32>
    %35 = arith.addf %33, %34 : vector<8x96xf32>
    %36 = vector.extract_strided_slice %32 {offsets = [0, 0], sizes = [8, 32], strides = [1, 1]} : vector<8x96xf32> to vector<8x32xf32>
    %37 = vector.extract_strided_slice %35 {offsets = [0, 0], sizes = [8, 32], strides = [1, 1]} : vector<8x96xf32> to vector<8x32xf32>
    %38 = arith.addf %36, %37 : vector<8x32xf32>
    %39 = arith.negf %38 : vector<8x32xf32>
    %40 = math.exp %39 : vector<8x32xf32>
    %cst_31 = arith.constant 1.000000e+00 : f32
    %41 = vector.broadcast %cst_31 : f32 to vector<8x32xf32>
    %42 = arith.addf %41, %40 : vector<8x32xf32>
    %43 = arith.divf %41, %42 : vector<8x32xf32>
    %44 = vector.extract_strided_slice %32 {offsets = [0, 32], sizes = [8, 32], strides = [1, 1]} : vector<8x96xf32> to vector<8x32xf32>
    %45 = vector.extract_strided_slice %35 {offsets = [0, 32], sizes = [8, 32], strides = [1, 1]} : vector<8x96xf32> to vector<8x32xf32>
    %46 = arith.addf %44, %45 : vector<8x32xf32>
    %47 = arith.negf %46 : vector<8x32xf32>
    %48 = math.exp %47 : vector<8x32xf32>
    %cst_32 = arith.constant 1.000000e+00 : f32
    %49 = vector.broadcast %cst_32 : f32 to vector<8x32xf32>
    %50 = arith.addf %49, %48 : vector<8x32xf32>
    %51 = arith.divf %49, %50 : vector<8x32xf32>
    %52 = vector.extract_strided_slice %32 {offsets = [0, 64], sizes = [8, 32], strides = [1, 1]} : vector<8x96xf32> to vector<8x32xf32>
    %53 = vector.extract_strided_slice %35 {offsets = [0, 64], sizes = [8, 32], strides = [1, 1]} : vector<8x96xf32> to vector<8x32xf32>
    %54 = arith.mulf %43, %53 : vector<8x32xf32>
    %55 = arith.addf %52, %54 : vector<8x32xf32>
    %56 = math.tanh %55 : vector<8x32xf32>
    %cst_33 = arith.constant 1.000000e+00 : f32
    %57 = vector.broadcast %cst_33 : f32 to vector<8x32xf32>
    %58 = arith.subf %57, %51 : vector<8x32xf32>
    %59 = arith.mulf %58, %56 : vector<8x32xf32>
    %60 = arith.mulf %51, %25 : vector<8x32xf32>
    %61 = arith.addf %59, %60 : vector<8x32xf32>
    %62 = arith.index_cast %30 : i32 to index
    %c0_34 = arith.constant 0 : index
    %63 = vector.load %arg18[%62, %c0_34] : memref<64x96xf32, #tpu.memory_space<vmem>>, vector<8x96xf32>
    %cst_35 = arith.constant dense<0.000000e+00> : vector<8x96xf32>
    %64 = tpu.matmul %25, %23, %cst_35 {dimension_numbers = #tpu.dot_dimension_numbers<[1], [0], [0], [1], [0, 0, 1, 1], [], []>} : vector<8x32xf32>, vector<32x96xf32>, vector<8x96xf32> -> vector<8x96xf32>
    %65 = vector.broadcast %24 : vector<1x96xf32> to vector<8x96xf32>
    %66 = arith.addf %64, %65 : vector<8x96xf32>
    %67 = vector.extract_strided_slice %63 {offsets = [0, 0], sizes = [8, 32], strides = [1, 1]} : vector<8x96xf32> to vector<8x32xf32>
    %68 = vector.extract_strided_slice %66 {offsets = [0, 0], sizes = [8, 32], strides = [1, 1]} : vector<8x96xf32> to vector<8x32xf32>
    %69 = arith.addf %67, %68 : vector<8x32xf32>
    %70 = arith.negf %69 : vector<8x32xf32>
    %71 = math.exp %70 : vector<8x32xf32>
    %cst_36 = arith.constant 1.000000e+00 : f32
    %72 = vector.broadcast %cst_36 : f32 to vector<8x32xf32>
    %73 = arith.addf %72, %71 : vector<8x32xf32>
    %74 = arith.divf %72, %73 : vector<8x32xf32>
    %75 = vector.extract_strided_slice %63 {offsets = [0, 32], sizes = [8, 32], strides = [1, 1]} : vector<8x96xf32> to vector<8x32xf32>
    %76 = vector.extract_strided_slice %66 {offsets = [0, 32], sizes = [8, 32], strides = [1, 1]} : vector<8x96xf32> to vector<8x32xf32>
    %77 = arith.addf %75, %76 : vector<8x32xf32>
    %78 = arith.negf %77 : vector<8x32xf32>
    %79 = math.exp %78 : vector<8x32xf32>
    %cst_37 = arith.constant 1.000000e+00 : f32
    %80 = vector.broadcast %cst_37 : f32 to vector<8x32xf32>
    %81 = arith.addf %80, %79 : vector<8x32xf32>
    %82 = arith.divf %80, %81 : vector<8x32xf32>
    %83 = vector.extract_strided_slice %63 {offsets = [0, 64], sizes = [8, 32], strides = [1, 1]} : vector<8x96xf32> to vector<8x32xf32>
    %84 = vector.extract_strided_slice %66 {offsets = [0, 64], sizes = [8, 32], strides = [1, 1]} : vector<8x96xf32> to vector<8x32xf32>
    %85 = arith.mulf %74, %84 : vector<8x32xf32>
    %86 = arith.addf %83, %85 : vector<8x32xf32>
    %87 = math.tanh %86 : vector<8x32xf32>
    %cst_38 = arith.constant 1.000000e+00 : f32
    %88 = vector.broadcast %cst_38 : f32 to vector<8x32xf32>
    %89 = arith.subf %88, %82 : vector<8x32xf32>
    %90 = arith.mulf %89, %87 : vector<8x32xf32>
    %91 = arith.mulf %82, %25 : vector<8x32xf32>
    %92 = arith.addf %90, %91 : vector<8x32xf32>
    %93 = vector.broadcast %c0_i32 : i32 to vector<8x1xi32>
    %94 = arith.cmpi slt, %93, %20 : vector<8x1xi32>
    %95 = vector.broadcast %26 : i32 to vector<8x1xi32>
    %96 = arith.cmpi slt, %95, %20 : vector<8x1xi32>
    %cst_39 = arith.constant 0.000000e+00 : f32
    %97 = vector.shape_cast %94 : vector<8x1xi1> to vector<8x1xi1>
    %98 = vector.broadcast %97 : vector<8x1xi1> to vector<8x32xi1>
    %99 = vector.broadcast %cst_39 : f32 to vector<8x32xf32>
    %100 = arith.select %98, %61, %99 : vector<8x32xi1>, vector<8x32xf32>
    %101 = arith.index_cast %28 : i32 to index
    %c0_40 = arith.constant 0 : index
    %102 = vector.load %arg14[%101, %c0_40] : memref<64x32xf32, #tpu.memory_space<vmem>>, vector<8x32xf32>
    tpu.vector_store %arg14[%101, %c0_40], %100 {strides = array<i32>} : memref<64x32xf32, #tpu.memory_space<vmem>>, vector<8x32xf32>,
    %cst_41 = arith.constant 0.000000e+00 : f32
    %103 = vector.shape_cast %96 : vector<8x1xi1> to vector<8x1xi1>
    %104 = vector.broadcast %103 : vector<8x1xi1> to vector<8x32xi1>
    %105 = vector.broadcast %cst_41 : f32 to vector<8x32xf32>
    %106 = arith.select %104, %92, %105 : vector<8x32xi1>, vector<8x32xf32>
    %107 = arith.index_cast %30 : i32 to index
    %c0_42 = arith.constant 0 : index
    %108 = vector.load %arg15[%107, %c0_42] : memref<64x32xf32, #tpu.memory_space<vmem>>, vector<8x32xf32>
    tpu.vector_store %arg15[%107, %c0_42], %106 {strides = array<i32>} : memref<64x32xf32, #tpu.memory_space<vmem>>, vector<8x32xf32>,
    %109 = vector.shape_cast %94 : vector<8x1xi1> to vector<8x1xi1>
    %110 = vector.broadcast %109 : vector<8x1xi1> to vector<8x32xi1>
    %111 = arith.select %110, %61, %25 : vector<8x32xi1>, vector<8x32xf32>
    %112 = vector.shape_cast %96 : vector<8x1xi1> to vector<8x1xi1>
    %113 = vector.broadcast %112 : vector<8x1xi1> to vector<8x32xi1>
    %114 = arith.select %113, %92, %25 : vector<8x32xi1>, vector<8x32xf32>
    %c1_i32 = arith.constant 1 : i32
    %c7_i32_43 = arith.constant 7 : i32
    %115 = arith.subi %c7_i32_43, %c1_i32 : i32
    %c8_i32_44 = arith.constant 8 : i32
    %116 = arith.muli %c1_i32, %c8_i32_44 : i32
    %117 = tpu.assume_multiple %116, 8 : i32
    %c8_i32_45 = arith.constant 8 : i32
    %118 = arith.muli %115, %c8_i32_45 : i32
    %119 = tpu.assume_multiple %118, 8 : i32
    %120 = arith.index_cast %117 : i32 to index
    %c0_46 = arith.constant 0 : index
    %121 = vector.load %arg17[%120, %c0_46] : memref<64x96xf32, #tpu.memory_space<vmem>>, vector<8x96xf32>
    %cst_47 = arith.constant dense<0.000000e+00> : vector<8x96xf32>
    %122 = tpu.matmul %111, %21, %cst_47 {dimension_numbers = #tpu.dot_dimension_numbers<[1], [0], [0], [1], [0, 0, 1, 1], [], []>} : vector<8x32xf32>, vector<32x96xf32>, vector<8x96xf32> -> vector<8x96xf32>
    %123 = vector.broadcast %22 : vector<1x96xf32> to vector<8x96xf32>
    %124 = arith.addf %122, %123 : vector<8x96xf32>
    %125 = vector.extract_strided_slice %121 {offsets = [0, 0], sizes = [8, 32], strides = [1, 1]} : vector<8x96xf32> to vector<8x32xf32>
    %126 = vector.extract_strided_slice %124 {offsets = [0, 0], sizes = [8, 32], strides = [1, 1]} : vector<8x96xf32> to vector<8x32xf32>
    %127 = arith.addf %125, %126 : vector<8x32xf32>
    %128 = arith.negf %127 : vector<8x32xf32>
    %129 = math.exp %128 : vector<8x32xf32>
    %cst_48 = arith.constant 1.000000e+00 : f32
    %130 = vector.broadcast %cst_48 : f32 to vector<8x32xf32>
    %131 = arith.addf %130, %129 : vector<8x32xf32>
    %132 = arith.divf %130, %131 : vector<8x32xf32>
    %133 = vector.extract_strided_slice %121 {offsets = [0, 32], sizes = [8, 32], strides = [1, 1]} : vector<8x96xf32> to vector<8x32xf32>
    %134 = vector.extract_strided_slice %124 {offsets = [0, 32], sizes = [8, 32], strides = [1, 1]} : vector<8x96xf32> to vector<8x32xf32>
    %135 = arith.addf %133, %134 : vector<8x32xf32>
    %136 = arith.negf %135 : vector<8x32xf32>
    %137 = math.exp %136 : vector<8x32xf32>
    %cst_49 = arith.constant 1.000000e+00 : f32
    %138 = vector.broadcast %cst_49 : f32 to vector<8x32xf32>
    %139 = arith.addf %138, %137 : vector<8x32xf32>
    %140 = arith.divf %138, %139 : vector<8x32xf32>
    %141 = vector.extract_strided_slice %121 {offsets = [0, 64], sizes = [8, 32], strides = [1, 1]} : vector<8x96xf32> to vector<8x32xf32>
    %142 = vector.extract_strided_slice %124 {offsets = [0, 64], sizes = [8, 32], strides = [1, 1]} : vector<8x96xf32> to vector<8x32xf32>
    %143 = arith.mulf %132, %142 : vector<8x32xf32>
    %144 = arith.addf %141, %143 : vector<8x32xf32>
    %145 = math.tanh %144 : vector<8x32xf32>
    %cst_50 = arith.constant 1.000000e+00 : f32
    %146 = vector.broadcast %cst_50 : f32 to vector<8x32xf32>
    %147 = arith.subf %146, %140 : vector<8x32xf32>
    %148 = arith.mulf %147, %145 : vector<8x32xf32>
    %149 = arith.mulf %140, %111 : vector<8x32xf32>
    %150 = arith.addf %148, %149 : vector<8x32xf32>
    %151 = arith.index_cast %119 : i32 to index
    %c0_51 = arith.constant 0 : index
    %152 = vector.load %arg18[%151, %c0_51] : memref<64x96xf32, #tpu.memory_space<vmem>>, vector<8x96xf32>
    %cst_52 = arith.constant dense<0.000000e+00> : vector<8x96xf32>
    %153 = tpu.matmul %114, %23, %cst_52 {dimension_numbers = #tpu.dot_dimension_numbers<[1], [0], [0], [1], [0, 0, 1, 1], [], []>} : vector<8x32xf32>, vector<32x96xf32>, vector<8x96xf32> -> vector<8x96xf32>
    %154 = vector.broadcast %24 : vector<1x96xf32> to vector<8x96xf32>
    %155 = arith.addf %153, %154 : vector<8x96xf32>
    %156 = vector.extract_strided_slice %152 {offsets = [0, 0], sizes = [8, 32], strides = [1, 1]} : vector<8x96xf32> to vector<8x32xf32>
    %157 = vector.extract_strided_slice %155 {offsets = [0, 0], sizes = [8, 32], strides = [1, 1]} : vector<8x96xf32> to vector<8x32xf32>
    %158 = arith.addf %156, %157 : vector<8x32xf32>
    %159 = arith.negf %158 : vector<8x32xf32>
    %160 = math.exp %159 : vector<8x32xf32>
    %cst_53 = arith.constant 1.000000e+00 : f32
    %161 = vector.broadcast %cst_53 : f32 to vector<8x32xf32>
    %162 = arith.addf %161, %160 : vector<8x32xf32>
    %163 = arith.divf %161, %162 : vector<8x32xf32>
    %164 = vector.extract_strided_slice %152 {offsets = [0, 32], sizes = [8, 32], strides = [1, 1]} : vector<8x96xf32> to vector<8x32xf32>
    %165 = vector.extract_strided_slice %155 {offsets = [0, 32], sizes = [8, 32], strides = [1, 1]} : vector<8x96xf32> to vector<8x32xf32>
    %166 = arith.addf %164, %165 : vector<8x32xf32>
    %167 = arith.negf %166 : vector<8x32xf32>
    %168 = math.exp %167 : vector<8x32xf32>
    %cst_54 = arith.constant 1.000000e+00 : f32
    %169 = vector.broadcast %cst_54 : f32 to vector<8x32xf32>
    %170 = arith.addf %169, %168 : vector<8x32xf32>
    %171 = arith.divf %169, %170 : vector<8x32xf32>
    %172 = vector.extract_strided_slice %152 {offsets = [0, 64], sizes = [8, 32], strides = [1, 1]} : vector<8x96xf32> to vector<8x32xf32>
    %173 = vector.extract_strided_slice %155 {offsets = [0, 64], sizes = [8, 32], strides = [1, 1]} : vector<8x96xf32> to vector<8x32xf32>
    %174 = arith.mulf %163, %173 : vector<8x32xf32>
    %175 = arith.addf %172, %174 : vector<8x32xf32>
    %176 = math.tanh %175 : vector<8x32xf32>
    %cst_55 = arith.constant 1.000000e+00 : f32
    %177 = vector.broadcast %cst_55 : f32 to vector<8x32xf32>
    %178 = arith.subf %177, %171 : vector<8x32xf32>
    %179 = arith.mulf %178, %176 : vector<8x32xf32>
    %180 = arith.mulf %171, %114 : vector<8x32xf32>
    %181 = arith.addf %179, %180 : vector<8x32xf32>
    %182 = vector.broadcast %c1_i32 : i32 to vector<8x1xi32>
    %183 = arith.cmpi slt, %182, %20 : vector<8x1xi32>
    %184 = vector.broadcast %115 : i32 to vector<8x1xi32>
    %185 = arith.cmpi slt, %184, %20 : vector<8x1xi32>
    %cst_56 = arith.constant 0.000000e+00 : f32
    %186 = vector.shape_cast %183 : vector<8x1xi1> to vector<8x1xi1>
    %187 = vector.broadcast %186 : vector<8x1xi1> to vector<8x32xi1>
    %188 = vector.broadcast %cst_56 : f32 to vector<8x32xf32>
    %189 = arith.select %187, %150, %188 : vector<8x32xi1>, vector<8x32xf32>
    %190 = arith.index_cast %117 : i32 to index
    %c0_57 = arith.constant 0 : index
    %191 = vector.load %arg14[%190, %c0_57] : memref<64x32xf32, #tpu.memory_space<vmem>>, vector<8x32xf32>
    tpu.vector_store %arg14[%190, %c0_57], %189 {strides = array<i32>} : memref<64x32xf32, #tpu.memory_space<vmem>>, vector<8x32xf32>,
    %cst_58 = arith.constant 0.000000e+00 : f32
    %192 = vector.shape_cast %185 : vector<8x1xi1> to vector<8x1xi1>
    %193 = vector.broadcast %192 : vector<8x1xi1> to vector<8x32xi1>
    %194 = vector.broadcast %cst_58 : f32 to vector<8x32xf32>
    %195 = arith.select %193, %181, %194 : vector<8x32xi1>, vector<8x32xf32>
    %196 = arith.index_cast %119 : i32 to index
    %c0_59 = arith.constant 0 : index
    %197 = vector.load %arg15[%196, %c0_59] : memref<64x32xf32, #tpu.memory_space<vmem>>, vector<8x32xf32>
    tpu.vector_store %arg15[%196, %c0_59], %195 {strides = array<i32>} : memref<64x32xf32, #tpu.memory_space<vmem>>, vector<8x32xf32>,
    %198 = vector.shape_cast %183 : vector<8x1xi1> to vector<8x1xi1>
    %199 = vector.broadcast %198 : vector<8x1xi1> to vector<8x32xi1>
    %200 = arith.select %199, %150, %111 : vector<8x32xi1>, vector<8x32xf32>
    %201 = vector.shape_cast %185 : vector<8x1xi1> to vector<8x1xi1>
    %202 = vector.broadcast %201 : vector<8x1xi1> to vector<8x32xi1>
    %203 = arith.select %202, %181, %114 : vector<8x32xi1>, vector<8x32xf32>
    %c2_i32 = arith.constant 2 : i32
    %c7_i32_60 = arith.constant 7 : i32
    %204 = arith.subi %c7_i32_60, %c2_i32 : i32
    %c8_i32_61 = arith.constant 8 : i32
    %205 = arith.muli %c2_i32, %c8_i32_61 : i32
    %206 = tpu.assume_multiple %205, 8 : i32
    %c8_i32_62 = arith.constant 8 : i32
    %207 = arith.muli %204, %c8_i32_62 : i32
    %208 = tpu.assume_multiple %207, 8 : i32
    %209 = arith.index_cast %206 : i32 to index
    %c0_63 = arith.constant 0 : index
    %210 = vector.load %arg17[%209, %c0_63] : memref<64x96xf32, #tpu.memory_space<vmem>>, vector<8x96xf32>
    %cst_64 = arith.constant dense<0.000000e+00> : vector<8x96xf32>
    %211 = tpu.matmul %200, %21, %cst_64 {dimension_numbers = #tpu.dot_dimension_numbers<[1], [0], [0], [1], [0, 0, 1, 1], [], []>} : vector<8x32xf32>, vector<32x96xf32>, vector<8x96xf32> -> vector<8x96xf32>
    %212 = vector.broadcast %22 : vector<1x96xf32> to vector<8x96xf32>
    %213 = arith.addf %211, %212 : vector<8x96xf32>
    %214 = vector.extract_strided_slice %210 {offsets = [0, 0], sizes = [8, 32], strides = [1, 1]} : vector<8x96xf32> to vector<8x32xf32>
    %215 = vector.extract_strided_slice %213 {offsets = [0, 0], sizes = [8, 32], strides = [1, 1]} : vector<8x96xf32> to vector<8x32xf32>
    %216 = arith.addf %214, %215 : vector<8x32xf32>
    %217 = arith.negf %216 : vector<8x32xf32>
    %218 = math.exp %217 : vector<8x32xf32>
    %cst_65 = arith.constant 1.000000e+00 : f32
    %219 = vector.broadcast %cst_65 : f32 to vector<8x32xf32>
    %220 = arith.addf %219, %218 : vector<8x32xf32>
    %221 = arith.divf %219, %220 : vector<8x32xf32>
    %222 = vector.extract_strided_slice %210 {offsets = [0, 32], sizes = [8, 32], strides = [1, 1]} : vector<8x96xf32> to vector<8x32xf32>
    %223 = vector.extract_strided_slice %213 {offsets = [0, 32], sizes = [8, 32], strides = [1, 1]} : vector<8x96xf32> to vector<8x32xf32>
    %224 = arith.addf %222, %223 : vector<8x32xf32>
    %225 = arith.negf %224 : vector<8x32xf32>
    %226 = math.exp %225 : vector<8x32xf32>
    %cst_66 = arith.constant 1.000000e+00 : f32
    %227 = vector.broadcast %cst_66 : f32 to vector<8x32xf32>
    %228 = arith.addf %227, %226 : vector<8x32xf32>
    %229 = arith.divf %227, %228 : vector<8x32xf32>
    %230 = vector.extract_strided_slice %210 {offsets = [0, 64], sizes = [8, 32], strides = [1, 1]} : vector<8x96xf32> to vector<8x32xf32>
    %231 = vector.extract_strided_slice %213 {offsets = [0, 64], sizes = [8, 32], strides = [1, 1]} : vector<8x96xf32> to vector<8x32xf32>
    %232 = arith.mulf %221, %231 : vector<8x32xf32>
    %233 = arith.addf %230, %232 : vector<8x32xf32>
    %234 = math.tanh %233 : vector<8x32xf32>
    %cst_67 = arith.constant 1.000000e+00 : f32
    %235 = vector.broadcast %cst_67 : f32 to vector<8x32xf32>
    %236 = arith.subf %235, %229 : vector<8x32xf32>
    %237 = arith.mulf %236, %234 : vector<8x32xf32>
    %238 = arith.mulf %229, %200 : vector<8x32xf32>
    %239 = arith.addf %237, %238 : vector<8x32xf32>
    %240 = arith.index_cast %208 : i32 to index
    %c0_68 = arith.constant 0 : index
    %241 = vector.load %arg18[%240, %c0_68] : memref<64x96xf32, #tpu.memory_space<vmem>>, vector<8x96xf32>
    %cst_69 = arith.constant dense<0.000000e+00> : vector<8x96xf32>
    %242 = tpu.matmul %203, %23, %cst_69 {dimension_numbers = #tpu.dot_dimension_numbers<[1], [0], [0], [1], [0, 0, 1, 1], [], []>} : vector<8x32xf32>, vector<32x96xf32>, vector<8x96xf32> -> vector<8x96xf32>
    %243 = vector.broadcast %24 : vector<1x96xf32> to vector<8x96xf32>
    %244 = arith.addf %242, %243 : vector<8x96xf32>
    %245 = vector.extract_strided_slice %241 {offsets = [0, 0], sizes = [8, 32], strides = [1, 1]} : vector<8x96xf32> to vector<8x32xf32>
    %246 = vector.extract_strided_slice %244 {offsets = [0, 0], sizes = [8, 32], strides = [1, 1]} : vector<8x96xf32> to vector<8x32xf32>
    %247 = arith.addf %245, %246 : vector<8x32xf32>
    %248 = arith.negf %247 : vector<8x32xf32>
    %249 = math.exp %248 : vector<8x32xf32>
    %cst_70 = arith.constant 1.000000e+00 : f32
    %250 = vector.broadcast %cst_70 : f32 to vector<8x32xf32>
    %251 = arith.addf %250, %249 : vector<8x32xf32>
    %252 = arith.divf %250, %251 : vector<8x32xf32>
    %253 = vector.extract_strided_slice %241 {offsets = [0, 32], sizes = [8, 32], strides = [1, 1]} : vector<8x96xf32> to vector<8x32xf32>
    %254 = vector.extract_strided_slice %244 {offsets = [0, 32], sizes = [8, 32], strides = [1, 1]} : vector<8x96xf32> to vector<8x32xf32>
    %255 = arith.addf %253, %254 : vector<8x32xf32>
    %256 = arith.negf %255 : vector<8x32xf32>
    %257 = math.exp %256 : vector<8x32xf32>
    %cst_71 = arith.constant 1.000000e+00 : f32
    %258 = vector.broadcast %cst_71 : f32 to vector<8x32xf32>
    %259 = arith.addf %258, %257 : vector<8x32xf32>
    %260 = arith.divf %258, %259 : vector<8x32xf32>
    %261 = vector.extract_strided_slice %241 {offsets = [0, 64], sizes = [8, 32], strides = [1, 1]} : vector<8x96xf32> to vector<8x32xf32>
    %262 = vector.extract_strided_slice %244 {offsets = [0, 64], sizes = [8, 32], strides = [1, 1]} : vector<8x96xf32> to vector<8x32xf32>
    %263 = arith.mulf %252, %262 : vector<8x32xf32>
    %264 = arith.addf %261, %263 : vector<8x32xf32>
    %265 = math.tanh %264 : vector<8x32xf32>
    %cst_72 = arith.constant 1.000000e+00 : f32
    %266 = vector.broadcast %cst_72 : f32 to vector<8x32xf32>
    %267 = arith.subf %266, %260 : vector<8x32xf32>
    %268 = arith.mulf %267, %265 : vector<8x32xf32>
    %269 = arith.mulf %260, %203 : vector<8x32xf32>
    %270 = arith.addf %268, %269 : vector<8x32xf32>
    %271 = vector.broadcast %c2_i32 : i32 to vector<8x1xi32>
    %272 = arith.cmpi slt, %271, %20 : vector<8x1xi32>
    %273 = vector.broadcast %204 : i32 to vector<8x1xi32>
    %274 = arith.cmpi slt, %273, %20 : vector<8x1xi32>
    %cst_73 = arith.constant 0.000000e+00 : f32
    %275 = vector.shape_cast %272 : vector<8x1xi1> to vector<8x1xi1>
    %276 = vector.broadcast %275 : vector<8x1xi1> to vector<8x32xi1>
    %277 = vector.broadcast %cst_73 : f32 to vector<8x32xf32>
    %278 = arith.select %276, %239, %277 : vector<8x32xi1>, vector<8x32xf32>
    %279 = arith.index_cast %206 : i32 to index
    %c0_74 = arith.constant 0 : index
    %280 = vector.load %arg14[%279, %c0_74] : memref<64x32xf32, #tpu.memory_space<vmem>>, vector<8x32xf32>
    tpu.vector_store %arg14[%279, %c0_74], %278 {strides = array<i32>} : memref<64x32xf32, #tpu.memory_space<vmem>>, vector<8x32xf32>,
    %cst_75 = arith.constant 0.000000e+00 : f32
    %281 = vector.shape_cast %274 : vector<8x1xi1> to vector<8x1xi1>
    %282 = vector.broadcast %281 : vector<8x1xi1> to vector<8x32xi1>
    %283 = vector.broadcast %cst_75 : f32 to vector<8x32xf32>
    %284 = arith.select %282, %270, %283 : vector<8x32xi1>, vector<8x32xf32>
    %285 = arith.index_cast %208 : i32 to index
    %c0_76 = arith.constant 0 : index
    %286 = vector.load %arg15[%285, %c0_76] : memref<64x32xf32, #tpu.memory_space<vmem>>, vector<8x32xf32>
    tpu.vector_store %arg15[%285, %c0_76], %284 {strides = array<i32>} : memref<64x32xf32, #tpu.memory_space<vmem>>, vector<8x32xf32>,
    %287 = vector.shape_cast %272 : vector<8x1xi1> to vector<8x1xi1>
    %288 = vector.broadcast %287 : vector<8x1xi1> to vector<8x32xi1>
    %289 = arith.select %288, %239, %200 : vector<8x32xi1>, vector<8x32xf32>
    %290 = vector.shape_cast %274 : vector<8x1xi1> to vector<8x1xi1>
    %291 = vector.broadcast %290 : vector<8x1xi1> to vector<8x32xi1>
    %292 = arith.select %291, %270, %203 : vector<8x32xi1>, vector<8x32xf32>
    %c3_i32 = arith.constant 3 : i32
    %c7_i32_77 = arith.constant 7 : i32
    %293 = arith.subi %c7_i32_77, %c3_i32 : i32
    %c8_i32_78 = arith.constant 8 : i32
    %294 = arith.muli %c3_i32, %c8_i32_78 : i32
    %295 = tpu.assume_multiple %294, 8 : i32
    %c8_i32_79 = arith.constant 8 : i32
    %296 = arith.muli %293, %c8_i32_79 : i32
    %297 = tpu.assume_multiple %296, 8 : i32
    %298 = arith.index_cast %295 : i32 to index
    %c0_80 = arith.constant 0 : index
    %299 = vector.load %arg17[%298, %c0_80] : memref<64x96xf32, #tpu.memory_space<vmem>>, vector<8x96xf32>
    %cst_81 = arith.constant dense<0.000000e+00> : vector<8x96xf32>
    %300 = tpu.matmul %289, %21, %cst_81 {dimension_numbers = #tpu.dot_dimension_numbers<[1], [0], [0], [1], [0, 0, 1, 1], [], []>} : vector<8x32xf32>, vector<32x96xf32>, vector<8x96xf32> -> vector<8x96xf32>
    %301 = vector.broadcast %22 : vector<1x96xf32> to vector<8x96xf32>
    %302 = arith.addf %300, %301 : vector<8x96xf32>
    %303 = vector.extract_strided_slice %299 {offsets = [0, 0], sizes = [8, 32], strides = [1, 1]} : vector<8x96xf32> to vector<8x32xf32>
    %304 = vector.extract_strided_slice %302 {offsets = [0, 0], sizes = [8, 32], strides = [1, 1]} : vector<8x96xf32> to vector<8x32xf32>
    %305 = arith.addf %303, %304 : vector<8x32xf32>
    %306 = arith.negf %305 : vector<8x32xf32>
    %307 = math.exp %306 : vector<8x32xf32>
    %cst_82 = arith.constant 1.000000e+00 : f32
    %308 = vector.broadcast %cst_82 : f32 to vector<8x32xf32>
    %309 = arith.addf %308, %307 : vector<8x32xf32>
    %310 = arith.divf %308, %309 : vector<8x32xf32>
    %311 = vector.extract_strided_slice %299 {offsets = [0, 32], sizes = [8, 32], strides = [1, 1]} : vector<8x96xf32> to vector<8x32xf32>
    %312 = vector.extract_strided_slice %302 {offsets = [0, 32], sizes = [8, 32], strides = [1, 1]} : vector<8x96xf32> to vector<8x32xf32>
    %313 = arith.addf %311, %312 : vector<8x32xf32>
    %314 = arith.negf %313 : vector<8x32xf32>
    %315 = math.exp %314 : vector<8x32xf32>
    %cst_83 = arith.constant 1.000000e+00 : f32
    %316 = vector.broadcast %cst_83 : f32 to vector<8x32xf32>
    %317 = arith.addf %316, %315 : vector<8x32xf32>
    %318 = arith.divf %316, %317 : vector<8x32xf32>
    %319 = vector.extract_strided_slice %299 {offsets = [0, 64], sizes = [8, 32], strides = [1, 1]} : vector<8x96xf32> to vector<8x32xf32>
    %320 = vector.extract_strided_slice %302 {offsets = [0, 64], sizes = [8, 32], strides = [1, 1]} : vector<8x96xf32> to vector<8x32xf32>
    %321 = arith.mulf %310, %320 : vector<8x32xf32>
    %322 = arith.addf %319, %321 : vector<8x32xf32>
    %323 = math.tanh %322 : vector<8x32xf32>
    %cst_84 = arith.constant 1.000000e+00 : f32
    %324 = vector.broadcast %cst_84 : f32 to vector<8x32xf32>
    %325 = arith.subf %324, %318 : vector<8x32xf32>
    %326 = arith.mulf %325, %323 : vector<8x32xf32>
    %327 = arith.mulf %318, %289 : vector<8x32xf32>
    %328 = arith.addf %326, %327 : vector<8x32xf32>
    %329 = arith.index_cast %297 : i32 to index
    %c0_85 = arith.constant 0 : index
    %330 = vector.load %arg18[%329, %c0_85] : memref<64x96xf32, #tpu.memory_space<vmem>>, vector<8x96xf32>
    %cst_86 = arith.constant dense<0.000000e+00> : vector<8x96xf32>
    %331 = tpu.matmul %292, %23, %cst_86 {dimension_numbers = #tpu.dot_dimension_numbers<[1], [0], [0], [1], [0, 0, 1, 1], [], []>} : vector<8x32xf32>, vector<32x96xf32>, vector<8x96xf32> -> vector<8x96xf32>
    %332 = vector.broadcast %24 : vector<1x96xf32> to vector<8x96xf32>
    %333 = arith.addf %331, %332 : vector<8x96xf32>
    %334 = vector.extract_strided_slice %330 {offsets = [0, 0], sizes = [8, 32], strides = [1, 1]} : vector<8x96xf32> to vector<8x32xf32>
    %335 = vector.extract_strided_slice %333 {offsets = [0, 0], sizes = [8, 32], strides = [1, 1]} : vector<8x96xf32> to vector<8x32xf32>
    %336 = arith.addf %334, %335 : vector<8x32xf32>
    %337 = arith.negf %336 : vector<8x32xf32>
    %338 = math.exp %337 : vector<8x32xf32>
    %cst_87 = arith.constant 1.000000e+00 : f32
    %339 = vector.broadcast %cst_87 : f32 to vector<8x32xf32>
    %340 = arith.addf %339, %338 : vector<8x32xf32>
    %341 = arith.divf %339, %340 : vector<8x32xf32>
    %342 = vector.extract_strided_slice %330 {offsets = [0, 32], sizes = [8, 32], strides = [1, 1]} : vector<8x96xf32> to vector<8x32xf32>
    %343 = vector.extract_strided_slice %333 {offsets = [0, 32], sizes = [8, 32], strides = [1, 1]} : vector<8x96xf32> to vector<8x32xf32>
    %344 = arith.addf %342, %343 : vector<8x32xf32>
    %345 = arith.negf %344 : vector<8x32xf32>
    %346 = math.exp %345 : vector<8x32xf32>
    %cst_88 = arith.constant 1.000000e+00 : f32
    %347 = vector.broadcast %cst_88 : f32 to vector<8x32xf32>
    %348 = arith.addf %347, %346 : vector<8x32xf32>
    %349 = arith.divf %347, %348 : vector<8x32xf32>
    %350 = vector.extract_strided_slice %330 {offsets = [0, 64], sizes = [8, 32], strides = [1, 1]} : vector<8x96xf32> to vector<8x32xf32>
    %351 = vector.extract_strided_slice %333 {offsets = [0, 64], sizes = [8, 32], strides = [1, 1]} : vector<8x96xf32> to vector<8x32xf32>
    %352 = arith.mulf %341, %351 : vector<8x32xf32>
    %353 = arith.addf %350, %352 : vector<8x32xf32>
    %354 = math.tanh %353 : vector<8x32xf32>
    %cst_89 = arith.constant 1.000000e+00 : f32
    %355 = vector.broadcast %cst_89 : f32 to vector<8x32xf32>
    %356 = arith.subf %355, %349 : vector<8x32xf32>
    %357 = arith.mulf %356, %354 : vector<8x32xf32>
    %358 = arith.mulf %349, %292 : vector<8x32xf32>
    %359 = arith.addf %357, %358 : vector<8x32xf32>
    %360 = vector.broadcast %c3_i32 : i32 to vector<8x1xi32>
    %361 = arith.cmpi slt, %360, %20 : vector<8x1xi32>
    %362 = vector.broadcast %293 : i32 to vector<8x1xi32>
    %363 = arith.cmpi slt, %362, %20 : vector<8x1xi32>
    %cst_90 = arith.constant 0.000000e+00 : f32
    %364 = vector.shape_cast %361 : vector<8x1xi1> to vector<8x1xi1>
    %365 = vector.broadcast %364 : vector<8x1xi1> to vector<8x32xi1>
    %366 = vector.broadcast %cst_90 : f32 to vector<8x32xf32>
    %367 = arith.select %365, %328, %366 : vector<8x32xi1>, vector<8x32xf32>
    %368 = arith.index_cast %295 : i32 to index
    %c0_91 = arith.constant 0 : index
    %369 = vector.load %arg14[%368, %c0_91] : memref<64x32xf32, #tpu.memory_space<vmem>>, vector<8x32xf32>
    tpu.vector_store %arg14[%368, %c0_91], %367 {strides = array<i32>} : memref<64x32xf32, #tpu.memory_space<vmem>>, vector<8x32xf32>,
    %cst_92 = arith.constant 0.000000e+00 : f32
    %370 = vector.shape_cast %363 : vector<8x1xi1> to vector<8x1xi1>
    %371 = vector.broadcast %370 : vector<8x1xi1> to vector<8x32xi1>
    %372 = vector.broadcast %cst_92 : f32 to vector<8x32xf32>
    %373 = arith.select %371, %359, %372 : vector<8x32xi1>, vector<8x32xf32>
    %374 = arith.index_cast %297 : i32 to index
    %c0_93 = arith.constant 0 : index
    %375 = vector.load %arg15[%374, %c0_93] : memref<64x32xf32, #tpu.memory_space<vmem>>, vector<8x32xf32>
    tpu.vector_store %arg15[%374, %c0_93], %373 {strides = array<i32>} : memref<64x32xf32, #tpu.memory_space<vmem>>, vector<8x32xf32>,
    %376 = vector.shape_cast %361 : vector<8x1xi1> to vector<8x1xi1>
    %377 = vector.broadcast %376 : vector<8x1xi1> to vector<8x32xi1>
    %378 = arith.select %377, %328, %289 : vector<8x32xi1>, vector<8x32xf32>
    %379 = vector.shape_cast %363 : vector<8x1xi1> to vector<8x1xi1>
    %380 = vector.broadcast %379 : vector<8x1xi1> to vector<8x32xi1>
    %381 = arith.select %380, %359, %292 : vector<8x32xi1>, vector<8x32xf32>
    %c4_i32 = arith.constant 4 : i32
    %c7_i32_94 = arith.constant 7 : i32
    %382 = arith.subi %c7_i32_94, %c4_i32 : i32
    %c8_i32_95 = arith.constant 8 : i32
    %383 = arith.muli %c4_i32, %c8_i32_95 : i32
    %384 = tpu.assume_multiple %383, 8 : i32
    %c8_i32_96 = arith.constant 8 : i32
    %385 = arith.muli %382, %c8_i32_96 : i32
    %386 = tpu.assume_multiple %385, 8 : i32
    %387 = arith.index_cast %384 : i32 to index
    %c0_97 = arith.constant 0 : index
    %388 = vector.load %arg17[%387, %c0_97] : memref<64x96xf32, #tpu.memory_space<vmem>>, vector<8x96xf32>
    %cst_98 = arith.constant dense<0.000000e+00> : vector<8x96xf32>
    %389 = tpu.matmul %378, %21, %cst_98 {dimension_numbers = #tpu.dot_dimension_numbers<[1], [0], [0], [1], [0, 0, 1, 1], [], []>} : vector<8x32xf32>, vector<32x96xf32>, vector<8x96xf32> -> vector<8x96xf32>
    %390 = vector.broadcast %22 : vector<1x96xf32> to vector<8x96xf32>
    %391 = arith.addf %389, %390 : vector<8x96xf32>
    %392 = vector.extract_strided_slice %388 {offsets = [0, 0], sizes = [8, 32], strides = [1, 1]} : vector<8x96xf32> to vector<8x32xf32>
    %393 = vector.extract_strided_slice %391 {offsets = [0, 0], sizes = [8, 32], strides = [1, 1]} : vector<8x96xf32> to vector<8x32xf32>
    %394 = arith.addf %392, %393 : vector<8x32xf32>
    %395 = arith.negf %394 : vector<8x32xf32>
    %396 = math.exp %395 : vector<8x32xf32>
    %cst_99 = arith.constant 1.000000e+00 : f32
    %397 = vector.broadcast %cst_99 : f32 to vector<8x32xf32>
    %398 = arith.addf %397, %396 : vector<8x32xf32>
    %399 = arith.divf %397, %398 : vector<8x32xf32>
    %400 = vector.extract_strided_slice %388 {offsets = [0, 32], sizes = [8, 32], strides = [1, 1]} : vector<8x96xf32> to vector<8x32xf32>
    %401 = vector.extract_strided_slice %391 {offsets = [0, 32], sizes = [8, 32], strides = [1, 1]} : vector<8x96xf32> to vector<8x32xf32>
    %402 = arith.addf %400, %401 : vector<8x32xf32>
    %403 = arith.negf %402 : vector<8x32xf32>
    %404 = math.exp %403 : vector<8x32xf32>
    %cst_100 = arith.constant 1.000000e+00 : f32
    %405 = vector.broadcast %cst_100 : f32 to vector<8x32xf32>
    %406 = arith.addf %405, %404 : vector<8x32xf32>
    %407 = arith.divf %405, %406 : vector<8x32xf32>
    %408 = vector.extract_strided_slice %388 {offsets = [0, 64], sizes = [8, 32], strides = [1, 1]} : vector<8x96xf32> to vector<8x32xf32>
    %409 = vector.extract_strided_slice %391 {offsets = [0, 64], sizes = [8, 32], strides = [1, 1]} : vector<8x96xf32> to vector<8x32xf32>
    %410 = arith.mulf %399, %409 : vector<8x32xf32>
    %411 = arith.addf %408, %410 : vector<8x32xf32>
    %412 = math.tanh %411 : vector<8x32xf32>
    %cst_101 = arith.constant 1.000000e+00 : f32
    %413 = vector.broadcast %cst_101 : f32 to vector<8x32xf32>
    %414 = arith.subf %413, %407 : vector<8x32xf32>
    %415 = arith.mulf %414, %412 : vector<8x32xf32>
    %416 = arith.mulf %407, %378 : vector<8x32xf32>
    %417 = arith.addf %415, %416 : vector<8x32xf32>
    %418 = arith.index_cast %386 : i32 to index
    %c0_102 = arith.constant 0 : index
    %419 = vector.load %arg18[%418, %c0_102] : memref<64x96xf32, #tpu.memory_space<vmem>>, vector<8x96xf32>
    %cst_103 = arith.constant dense<0.000000e+00> : vector<8x96xf32>
    %420 = tpu.matmul %381, %23, %cst_103 {dimension_numbers = #tpu.dot_dimension_numbers<[1], [0], [0], [1], [0, 0, 1, 1], [], []>} : vector<8x32xf32>, vector<32x96xf32>, vector<8x96xf32> -> vector<8x96xf32>
    %421 = vector.broadcast %24 : vector<1x96xf32> to vector<8x96xf32>
    %422 = arith.addf %420, %421 : vector<8x96xf32>
    %423 = vector.extract_strided_slice %419 {offsets = [0, 0], sizes = [8, 32], strides = [1, 1]} : vector<8x96xf32> to vector<8x32xf32>
    %424 = vector.extract_strided_slice %422 {offsets = [0, 0], sizes = [8, 32], strides = [1, 1]} : vector<8x96xf32> to vector<8x32xf32>
    %425 = arith.addf %423, %424 : vector<8x32xf32>
    %426 = arith.negf %425 : vector<8x32xf32>
    %427 = math.exp %426 : vector<8x32xf32>
    %cst_104 = arith.constant 1.000000e+00 : f32
    %428 = vector.broadcast %cst_104 : f32 to vector<8x32xf32>
    %429 = arith.addf %428, %427 : vector<8x32xf32>
    %430 = arith.divf %428, %429 : vector<8x32xf32>
    %431 = vector.extract_strided_slice %419 {offsets = [0, 32], sizes = [8, 32], strides = [1, 1]} : vector<8x96xf32> to vector<8x32xf32>
    %432 = vector.extract_strided_slice %422 {offsets = [0, 32], sizes = [8, 32], strides = [1, 1]} : vector<8x96xf32> to vector<8x32xf32>
    %433 = arith.addf %431, %432 : vector<8x32xf32>
    %434 = arith.negf %433 : vector<8x32xf32>
    %435 = math.exp %434 : vector<8x32xf32>
    %cst_105 = arith.constant 1.000000e+00 : f32
    %436 = vector.broadcast %cst_105 : f32 to vector<8x32xf32>
    %437 = arith.addf %436, %435 : vector<8x32xf32>
    %438 = arith.divf %436, %437 : vector<8x32xf32>
    %439 = vector.extract_strided_slice %419 {offsets = [0, 64], sizes = [8, 32], strides = [1, 1]} : vector<8x96xf32> to vector<8x32xf32>
    %440 = vector.extract_strided_slice %422 {offsets = [0, 64], sizes = [8, 32], strides = [1, 1]} : vector<8x96xf32> to vector<8x32xf32>
    %441 = arith.mulf %430, %440 : vector<8x32xf32>
    %442 = arith.addf %439, %441 : vector<8x32xf32>
    %443 = math.tanh %442 : vector<8x32xf32>
    %cst_106 = arith.constant 1.000000e+00 : f32
    %444 = vector.broadcast %cst_106 : f32 to vector<8x32xf32>
    %445 = arith.subf %444, %438 : vector<8x32xf32>
    %446 = arith.mulf %445, %443 : vector<8x32xf32>
    %447 = arith.mulf %438, %381 : vector<8x32xf32>
    %448 = arith.addf %446, %447 : vector<8x32xf32>
    %449 = vector.broadcast %c4_i32 : i32 to vector<8x1xi32>
    %450 = arith.cmpi slt, %449, %20 : vector<8x1xi32>
    %451 = vector.broadcast %382 : i32 to vector<8x1xi32>
    %452 = arith.cmpi slt, %451, %20 : vector<8x1xi32>
    %cst_107 = arith.constant 0.000000e+00 : f32
    %453 = vector.shape_cast %450 : vector<8x1xi1> to vector<8x1xi1>
    %454 = vector.broadcast %453 : vector<8x1xi1> to vector<8x32xi1>
    %455 = vector.broadcast %cst_107 : f32 to vector<8x32xf32>
    %456 = arith.select %454, %417, %455 : vector<8x32xi1>, vector<8x32xf32>
    %457 = arith.index_cast %384 : i32 to index
    %c0_108 = arith.constant 0 : index
    %458 = vector.load %arg14[%457, %c0_108] : memref<64x32xf32, #tpu.memory_space<vmem>>, vector<8x32xf32>
    tpu.vector_store %arg14[%457, %c0_108], %456 {strides = array<i32>} : memref<64x32xf32, #tpu.memory_space<vmem>>, vector<8x32xf32>,
    %cst_109 = arith.constant 0.000000e+00 : f32
    %459 = vector.shape_cast %452 : vector<8x1xi1> to vector<8x1xi1>
    %460 = vector.broadcast %459 : vector<8x1xi1> to vector<8x32xi1>
    %461 = vector.broadcast %cst_109 : f32 to vector<8x32xf32>
    %462 = arith.select %460, %448, %461 : vector<8x32xi1>, vector<8x32xf32>
    %463 = arith.index_cast %386 : i32 to index
    %c0_110 = arith.constant 0 : index
    %464 = vector.load %arg15[%463, %c0_110] : memref<64x32xf32, #tpu.memory_space<vmem>>, vector<8x32xf32>
    tpu.vector_store %arg15[%463, %c0_110], %462 {strides = array<i32>} : memref<64x32xf32, #tpu.memory_space<vmem>>, vector<8x32xf32>,
    %465 = vector.shape_cast %450 : vector<8x1xi1> to vector<8x1xi1>
    %466 = vector.broadcast %465 : vector<8x1xi1> to vector<8x32xi1>
    %467 = arith.select %466, %417, %378 : vector<8x32xi1>, vector<8x32xf32>
    %468 = vector.shape_cast %452 : vector<8x1xi1> to vector<8x1xi1>
    %469 = vector.broadcast %468 : vector<8x1xi1> to vector<8x32xi1>
    %470 = arith.select %469, %448, %381 : vector<8x32xi1>, vector<8x32xf32>
    %c5_i32 = arith.constant 5 : i32
    %c7_i32_111 = arith.constant 7 : i32
    %471 = arith.subi %c7_i32_111, %c5_i32 : i32
    %c8_i32_112 = arith.constant 8 : i32
    %472 = arith.muli %c5_i32, %c8_i32_112 : i32
    %473 = tpu.assume_multiple %472, 8 : i32
    %c8_i32_113 = arith.constant 8 : i32
    %474 = arith.muli %471, %c8_i32_113 : i32
    %475 = tpu.assume_multiple %474, 8 : i32
    %476 = arith.index_cast %473 : i32 to index
    %c0_114 = arith.constant 0 : index
    %477 = vector.load %arg17[%476, %c0_114] : memref<64x96xf32, #tpu.memory_space<vmem>>, vector<8x96xf32>
    %cst_115 = arith.constant dense<0.000000e+00> : vector<8x96xf32>
    %478 = tpu.matmul %467, %21, %cst_115 {dimension_numbers = #tpu.dot_dimension_numbers<[1], [0], [0], [1], [0, 0, 1, 1], [], []>} : vector<8x32xf32>, vector<32x96xf32>, vector<8x96xf32> -> vector<8x96xf32>
    %479 = vector.broadcast %22 : vector<1x96xf32> to vector<8x96xf32>
    %480 = arith.addf %478, %479 : vector<8x96xf32>
    %481 = vector.extract_strided_slice %477 {offsets = [0, 0], sizes = [8, 32], strides = [1, 1]} : vector<8x96xf32> to vector<8x32xf32>
    %482 = vector.extract_strided_slice %480 {offsets = [0, 0], sizes = [8, 32], strides = [1, 1]} : vector<8x96xf32> to vector<8x32xf32>
    %483 = arith.addf %481, %482 : vector<8x32xf32>
    %484 = arith.negf %483 : vector<8x32xf32>
    %485 = math.exp %484 : vector<8x32xf32>
    %cst_116 = arith.constant 1.000000e+00 : f32
    %486 = vector.broadcast %cst_116 : f32 to vector<8x32xf32>
    %487 = arith.addf %486, %485 : vector<8x32xf32>
    %488 = arith.divf %486, %487 : vector<8x32xf32>
    %489 = vector.extract_strided_slice %477 {offsets = [0, 32], sizes = [8, 32], strides = [1, 1]} : vector<8x96xf32> to vector<8x32xf32>
    %490 = vector.extract_strided_slice %480 {offsets = [0, 32], sizes = [8, 32], strides = [1, 1]} : vector<8x96xf32> to vector<8x32xf32>
    %491 = arith.addf %489, %490 : vector<8x32xf32>
    %492 = arith.negf %491 : vector<8x32xf32>
    %493 = math.exp %492 : vector<8x32xf32>
    %cst_117 = arith.constant 1.000000e+00 : f32
    %494 = vector.broadcast %cst_117 : f32 to vector<8x32xf32>
    %495 = arith.addf %494, %493 : vector<8x32xf32>
    %496 = arith.divf %494, %495 : vector<8x32xf32>
    %497 = vector.extract_strided_slice %477 {offsets = [0, 64], sizes = [8, 32], strides = [1, 1]} : vector<8x96xf32> to vector<8x32xf32>
    %498 = vector.extract_strided_slice %480 {offsets = [0, 64], sizes = [8, 32], strides = [1, 1]} : vector<8x96xf32> to vector<8x32xf32>
    %499 = arith.mulf %488, %498 : vector<8x32xf32>
    %500 = arith.addf %497, %499 : vector<8x32xf32>
    %501 = math.tanh %500 : vector<8x32xf32>
    %cst_118 = arith.constant 1.000000e+00 : f32
    %502 = vector.broadcast %cst_118 : f32 to vector<8x32xf32>
    %503 = arith.subf %502, %496 : vector<8x32xf32>
    %504 = arith.mulf %503, %501 : vector<8x32xf32>
    %505 = arith.mulf %496, %467 : vector<8x32xf32>
    %506 = arith.addf %504, %505 : vector<8x32xf32>
    %507 = arith.index_cast %475 : i32 to index
    %c0_119 = arith.constant 0 : index
    %508 = vector.load %arg18[%507, %c0_119] : memref<64x96xf32, #tpu.memory_space<vmem>>, vector<8x96xf32>
    %cst_120 = arith.constant dense<0.000000e+00> : vector<8x96xf32>
    %509 = tpu.matmul %470, %23, %cst_120 {dimension_numbers = #tpu.dot_dimension_numbers<[1], [0], [0], [1], [0, 0, 1, 1], [], []>} : vector<8x32xf32>, vector<32x96xf32>, vector<8x96xf32> -> vector<8x96xf32>
    %510 = vector.broadcast %24 : vector<1x96xf32> to vector<8x96xf32>
    %511 = arith.addf %509, %510 : vector<8x96xf32>
    %512 = vector.extract_strided_slice %508 {offsets = [0, 0], sizes = [8, 32], strides = [1, 1]} : vector<8x96xf32> to vector<8x32xf32>
    %513 = vector.extract_strided_slice %511 {offsets = [0, 0], sizes = [8, 32], strides = [1, 1]} : vector<8x96xf32> to vector<8x32xf32>
    %514 = arith.addf %512, %513 : vector<8x32xf32>
    %515 = arith.negf %514 : vector<8x32xf32>
    %516 = math.exp %515 : vector<8x32xf32>
    %cst_121 = arith.constant 1.000000e+00 : f32
    %517 = vector.broadcast %cst_121 : f32 to vector<8x32xf32>
    %518 = arith.addf %517, %516 : vector<8x32xf32>
    %519 = arith.divf %517, %518 : vector<8x32xf32>
    %520 = vector.extract_strided_slice %508 {offsets = [0, 32], sizes = [8, 32], strides = [1, 1]} : vector<8x96xf32> to vector<8x32xf32>
    %521 = vector.extract_strided_slice %511 {offsets = [0, 32], sizes = [8, 32], strides = [1, 1]} : vector<8x96xf32> to vector<8x32xf32>
    %522 = arith.addf %520, %521 : vector<8x32xf32>
    %523 = arith.negf %522 : vector<8x32xf32>
    %524 = math.exp %523 : vector<8x32xf32>
    %cst_122 = arith.constant 1.000000e+00 : f32
    %525 = vector.broadcast %cst_122 : f32 to vector<8x32xf32>
    %526 = arith.addf %525, %524 : vector<8x32xf32>
    %527 = arith.divf %525, %526 : vector<8x32xf32>
    %528 = vector.extract_strided_slice %508 {offsets = [0, 64], sizes = [8, 32], strides = [1, 1]} : vector<8x96xf32> to vector<8x32xf32>
    %529 = vector.extract_strided_slice %511 {offsets = [0, 64], sizes = [8, 32], strides = [1, 1]} : vector<8x96xf32> to vector<8x32xf32>
    %530 = arith.mulf %519, %529 : vector<8x32xf32>
    %531 = arith.addf %528, %530 : vector<8x32xf32>
    %532 = math.tanh %531 : vector<8x32xf32>
    %cst_123 = arith.constant 1.000000e+00 : f32
    %533 = vector.broadcast %cst_123 : f32 to vector<8x32xf32>
    %534 = arith.subf %533, %527 : vector<8x32xf32>
    %535 = arith.mulf %534, %532 : vector<8x32xf32>
    %536 = arith.mulf %527, %470 : vector<8x32xf32>
    %537 = arith.addf %535, %536 : vector<8x32xf32>
    %538 = vector.broadcast %c5_i32 : i32 to vector<8x1xi32>
    %539 = arith.cmpi slt, %538, %20 : vector<8x1xi32>
    %540 = vector.broadcast %471 : i32 to vector<8x1xi32>
    %541 = arith.cmpi slt, %540, %20 : vector<8x1xi32>
    %cst_124 = arith.constant 0.000000e+00 : f32
    %542 = vector.shape_cast %539 : vector<8x1xi1> to vector<8x1xi1>
    %543 = vector.broadcast %542 : vector<8x1xi1> to vector<8x32xi1>
    %544 = vector.broadcast %cst_124 : f32 to vector<8x32xf32>
    %545 = arith.select %543, %506, %544 : vector<8x32xi1>, vector<8x32xf32>
    %546 = arith.index_cast %473 : i32 to index
    %c0_125 = arith.constant 0 : index
    %547 = vector.load %arg14[%546, %c0_125] : memref<64x32xf32, #tpu.memory_space<vmem>>, vector<8x32xf32>
    tpu.vector_store %arg14[%546, %c0_125], %545 {strides = array<i32>} : memref<64x32xf32, #tpu.memory_space<vmem>>, vector<8x32xf32>,
    %cst_126 = arith.constant 0.000000e+00 : f32
    %548 = vector.shape_cast %541 : vector<8x1xi1> to vector<8x1xi1>
    %549 = vector.broadcast %548 : vector<8x1xi1> to vector<8x32xi1>
    %550 = vector.broadcast %cst_126 : f32 to vector<8x32xf32>
    %551 = arith.select %549, %537, %550 : vector<8x32xi1>, vector<8x32xf32>
    %552 = arith.index_cast %475 : i32 to index
    %c0_127 = arith.constant 0 : index
    %553 = vector.load %arg15[%552, %c0_127] : memref<64x32xf32, #tpu.memory_space<vmem>>, vector<8x32xf32>
    tpu.vector_store %arg15[%552, %c0_127], %551 {strides = array<i32>} : memref<64x32xf32, #tpu.memory_space<vmem>>, vector<8x32xf32>,
    %554 = vector.shape_cast %539 : vector<8x1xi1> to vector<8x1xi1>
    %555 = vector.broadcast %554 : vector<8x1xi1> to vector<8x32xi1>
    %556 = arith.select %555, %506, %467 : vector<8x32xi1>, vector<8x32xf32>
    %557 = vector.shape_cast %541 : vector<8x1xi1> to vector<8x1xi1>
    %558 = vector.broadcast %557 : vector<8x1xi1> to vector<8x32xi1>
    %559 = arith.select %558, %537, %470 : vector<8x32xi1>, vector<8x32xf32>
    %c6_i32 = arith.constant 6 : i32
    %c7_i32_128 = arith.constant 7 : i32
    %560 = arith.subi %c7_i32_128, %c6_i32 : i32
    %c8_i32_129 = arith.constant 8 : i32
    %561 = arith.muli %c6_i32, %c8_i32_129 : i32
    %562 = tpu.assume_multiple %561, 8 : i32
    %c8_i32_130 = arith.constant 8 : i32
    %563 = arith.muli %560, %c8_i32_130 : i32
    %564 = tpu.assume_multiple %563, 8 : i32
    %565 = arith.index_cast %562 : i32 to index
    %c0_131 = arith.constant 0 : index
    %566 = vector.load %arg17[%565, %c0_131] : memref<64x96xf32, #tpu.memory_space<vmem>>, vector<8x96xf32>
    %cst_132 = arith.constant dense<0.000000e+00> : vector<8x96xf32>
    %567 = tpu.matmul %556, %21, %cst_132 {dimension_numbers = #tpu.dot_dimension_numbers<[1], [0], [0], [1], [0, 0, 1, 1], [], []>} : vector<8x32xf32>, vector<32x96xf32>, vector<8x96xf32> -> vector<8x96xf32>
    %568 = vector.broadcast %22 : vector<1x96xf32> to vector<8x96xf32>
    %569 = arith.addf %567, %568 : vector<8x96xf32>
    %570 = vector.extract_strided_slice %566 {offsets = [0, 0], sizes = [8, 32], strides = [1, 1]} : vector<8x96xf32> to vector<8x32xf32>
    %571 = vector.extract_strided_slice %569 {offsets = [0, 0], sizes = [8, 32], strides = [1, 1]} : vector<8x96xf32> to vector<8x32xf32>
    %572 = arith.addf %570, %571 : vector<8x32xf32>
    %573 = arith.negf %572 : vector<8x32xf32>
    %574 = math.exp %573 : vector<8x32xf32>
    %cst_133 = arith.constant 1.000000e+00 : f32
    %575 = vector.broadcast %cst_133 : f32 to vector<8x32xf32>
    %576 = arith.addf %575, %574 : vector<8x32xf32>
    %577 = arith.divf %575, %576 : vector<8x32xf32>
    %578 = vector.extract_strided_slice %566 {offsets = [0, 32], sizes = [8, 32], strides = [1, 1]} : vector<8x96xf32> to vector<8x32xf32>
    %579 = vector.extract_strided_slice %569 {offsets = [0, 32], sizes = [8, 32], strides = [1, 1]} : vector<8x96xf32> to vector<8x32xf32>
    %580 = arith.addf %578, %579 : vector<8x32xf32>
    %581 = arith.negf %580 : vector<8x32xf32>
    %582 = math.exp %581 : vector<8x32xf32>
    %cst_134 = arith.constant 1.000000e+00 : f32
    %583 = vector.broadcast %cst_134 : f32 to vector<8x32xf32>
    %584 = arith.addf %583, %582 : vector<8x32xf32>
    %585 = arith.divf %583, %584 : vector<8x32xf32>
    %586 = vector.extract_strided_slice %566 {offsets = [0, 64], sizes = [8, 32], strides = [1, 1]} : vector<8x96xf32> to vector<8x32xf32>
    %587 = vector.extract_strided_slice %569 {offsets = [0, 64], sizes = [8, 32], strides = [1, 1]} : vector<8x96xf32> to vector<8x32xf32>
    %588 = arith.mulf %577, %587 : vector<8x32xf32>
    %589 = arith.addf %586, %588 : vector<8x32xf32>
    %590 = math.tanh %589 : vector<8x32xf32>
    %cst_135 = arith.constant 1.000000e+00 : f32
    %591 = vector.broadcast %cst_135 : f32 to vector<8x32xf32>
    %592 = arith.subf %591, %585 : vector<8x32xf32>
    %593 = arith.mulf %592, %590 : vector<8x32xf32>
    %594 = arith.mulf %585, %556 : vector<8x32xf32>
    %595 = arith.addf %593, %594 : vector<8x32xf32>
    %596 = arith.index_cast %564 : i32 to index
    %c0_136 = arith.constant 0 : index
    %597 = vector.load %arg18[%596, %c0_136] : memref<64x96xf32, #tpu.memory_space<vmem>>, vector<8x96xf32>
    %cst_137 = arith.constant dense<0.000000e+00> : vector<8x96xf32>
    %598 = tpu.matmul %559, %23, %cst_137 {dimension_numbers = #tpu.dot_dimension_numbers<[1], [0], [0], [1], [0, 0, 1, 1], [], []>} : vector<8x32xf32>, vector<32x96xf32>, vector<8x96xf32> -> vector<8x96xf32>
    %599 = vector.broadcast %24 : vector<1x96xf32> to vector<8x96xf32>
    %600 = arith.addf %598, %599 : vector<8x96xf32>
    %601 = vector.extract_strided_slice %597 {offsets = [0, 0], sizes = [8, 32], strides = [1, 1]} : vector<8x96xf32> to vector<8x32xf32>
    %602 = vector.extract_strided_slice %600 {offsets = [0, 0], sizes = [8, 32], strides = [1, 1]} : vector<8x96xf32> to vector<8x32xf32>
    %603 = arith.addf %601, %602 : vector<8x32xf32>
    %604 = arith.negf %603 : vector<8x32xf32>
    %605 = math.exp %604 : vector<8x32xf32>
    %cst_138 = arith.constant 1.000000e+00 : f32
    %606 = vector.broadcast %cst_138 : f32 to vector<8x32xf32>
    %607 = arith.addf %606, %605 : vector<8x32xf32>
    %608 = arith.divf %606, %607 : vector<8x32xf32>
    %609 = vector.extract_strided_slice %597 {offsets = [0, 32], sizes = [8, 32], strides = [1, 1]} : vector<8x96xf32> to vector<8x32xf32>
    %610 = vector.extract_strided_slice %600 {offsets = [0, 32], sizes = [8, 32], strides = [1, 1]} : vector<8x96xf32> to vector<8x32xf32>
    %611 = arith.addf %609, %610 : vector<8x32xf32>
    %612 = arith.negf %611 : vector<8x32xf32>
    %613 = math.exp %612 : vector<8x32xf32>
    %cst_139 = arith.constant 1.000000e+00 : f32
    %614 = vector.broadcast %cst_139 : f32 to vector<8x32xf32>
    %615 = arith.addf %614, %613 : vector<8x32xf32>
    %616 = arith.divf %614, %615 : vector<8x32xf32>
    %617 = vector.extract_strided_slice %597 {offsets = [0, 64], sizes = [8, 32], strides = [1, 1]} : vector<8x96xf32> to vector<8x32xf32>
    %618 = vector.extract_strided_slice %600 {offsets = [0, 64], sizes = [8, 32], strides = [1, 1]} : vector<8x96xf32> to vector<8x32xf32>
    %619 = arith.mulf %608, %618 : vector<8x32xf32>
    %620 = arith.addf %617, %619 : vector<8x32xf32>
    %621 = math.tanh %620 : vector<8x32xf32>
    %cst_140 = arith.constant 1.000000e+00 : f32
    %622 = vector.broadcast %cst_140 : f32 to vector<8x32xf32>
    %623 = arith.subf %622, %616 : vector<8x32xf32>
    %624 = arith.mulf %623, %621 : vector<8x32xf32>
    %625 = arith.mulf %616, %559 : vector<8x32xf32>
    %626 = arith.addf %624, %625 : vector<8x32xf32>
    %627 = vector.broadcast %c6_i32 : i32 to vector<8x1xi32>
    %628 = arith.cmpi slt, %627, %20 : vector<8x1xi32>
    %629 = vector.broadcast %560 : i32 to vector<8x1xi32>
    %630 = arith.cmpi slt, %629, %20 : vector<8x1xi32>
    %cst_141 = arith.constant 0.000000e+00 : f32
    %631 = vector.shape_cast %628 : vector<8x1xi1> to vector<8x1xi1>
    %632 = vector.broadcast %631 : vector<8x1xi1> to vector<8x32xi1>
    %633 = vector.broadcast %cst_141 : f32 to vector<8x32xf32>
    %634 = arith.select %632, %595, %633 : vector<8x32xi1>, vector<8x32xf32>
    %635 = arith.index_cast %562 : i32 to index
    %c0_142 = arith.constant 0 : index
    %636 = vector.load %arg14[%635, %c0_142] : memref<64x32xf32, #tpu.memory_space<vmem>>, vector<8x32xf32>
    tpu.vector_store %arg14[%635, %c0_142], %634 {strides = array<i32>} : memref<64x32xf32, #tpu.memory_space<vmem>>, vector<8x32xf32>,
    %cst_143 = arith.constant 0.000000e+00 : f32
    %637 = vector.shape_cast %630 : vector<8x1xi1> to vector<8x1xi1>
    %638 = vector.broadcast %637 : vector<8x1xi1> to vector<8x32xi1>
    %639 = vector.broadcast %cst_143 : f32 to vector<8x32xf32>
    %640 = arith.select %638, %626, %639 : vector<8x32xi1>, vector<8x32xf32>
    %641 = arith.index_cast %564 : i32 to index
    %c0_144 = arith.constant 0 : index
    %642 = vector.load %arg15[%641, %c0_144] : memref<64x32xf32, #tpu.memory_space<vmem>>, vector<8x32xf32>
    tpu.vector_store %arg15[%641, %c0_144], %640 {strides = array<i32>} : memref<64x32xf32, #tpu.memory_space<vmem>>, vector<8x32xf32>,
    %643 = vector.shape_cast %628 : vector<8x1xi1> to vector<8x1xi1>
    %644 = vector.broadcast %643 : vector<8x1xi1> to vector<8x32xi1>
    %645 = arith.select %644, %595, %556 : vector<8x32xi1>, vector<8x32xf32>
    %646 = vector.shape_cast %630 : vector<8x1xi1> to vector<8x1xi1>
    %647 = vector.broadcast %646 : vector<8x1xi1> to vector<8x32xi1>
    %648 = arith.select %647, %626, %559 : vector<8x32xi1>, vector<8x32xf32>
    %c7_i32_145 = arith.constant 7 : i32
    %c7_i32_146 = arith.constant 7 : i32
    %649 = arith.subi %c7_i32_146, %c7_i32_145 : i32
    %c8_i32_147 = arith.constant 8 : i32
    %650 = arith.muli %c7_i32_145, %c8_i32_147 : i32
    %651 = tpu.assume_multiple %650, 8 : i32
    %c8_i32_148 = arith.constant 8 : i32
    %652 = arith.muli %649, %c8_i32_148 : i32
    %653 = tpu.assume_multiple %652, 8 : i32
    %654 = arith.index_cast %651 : i32 to index
    %c0_149 = arith.constant 0 : index
    %655 = vector.load %arg17[%654, %c0_149] : memref<64x96xf32, #tpu.memory_space<vmem>>, vector<8x96xf32>
    %cst_150 = arith.constant dense<0.000000e+00> : vector<8x96xf32>
    %656 = tpu.matmul %645, %21, %cst_150 {dimension_numbers = #tpu.dot_dimension_numbers<[1], [0], [0], [1], [0, 0, 1, 1], [], []>} : vector<8x32xf32>, vector<32x96xf32>, vector<8x96xf32> -> vector<8x96xf32>
    %657 = vector.broadcast %22 : vector<1x96xf32> to vector<8x96xf32>
    %658 = arith.addf %656, %657 : vector<8x96xf32>
    %659 = vector.extract_strided_slice %655 {offsets = [0, 0], sizes = [8, 32], strides = [1, 1]} : vector<8x96xf32> to vector<8x32xf32>
    %660 = vector.extract_strided_slice %658 {offsets = [0, 0], sizes = [8, 32], strides = [1, 1]} : vector<8x96xf32> to vector<8x32xf32>
    %661 = arith.addf %659, %660 : vector<8x32xf32>
    %662 = arith.negf %661 : vector<8x32xf32>
    %663 = math.exp %662 : vector<8x32xf32>
    %cst_151 = arith.constant 1.000000e+00 : f32
    %664 = vector.broadcast %cst_151 : f32 to vector<8x32xf32>
    %665 = arith.addf %664, %663 : vector<8x32xf32>
    %666 = arith.divf %664, %665 : vector<8x32xf32>
    %667 = vector.extract_strided_slice %655 {offsets = [0, 32], sizes = [8, 32], strides = [1, 1]} : vector<8x96xf32> to vector<8x32xf32>
    %668 = vector.extract_strided_slice %658 {offsets = [0, 32], sizes = [8, 32], strides = [1, 1]} : vector<8x96xf32> to vector<8x32xf32>
    %669 = arith.addf %667, %668 : vector<8x32xf32>
    %670 = arith.negf %669 : vector<8x32xf32>
    %671 = math.exp %670 : vector<8x32xf32>
    %cst_152 = arith.constant 1.000000e+00 : f32
    %672 = vector.broadcast %cst_152 : f32 to vector<8x32xf32>
    %673 = arith.addf %672, %671 : vector<8x32xf32>
    %674 = arith.divf %672, %673 : vector<8x32xf32>
    %675 = vector.extract_strided_slice %655 {offsets = [0, 64], sizes = [8, 32], strides = [1, 1]} : vector<8x96xf32> to vector<8x32xf32>
    %676 = vector.extract_strided_slice %658 {offsets = [0, 64], sizes = [8, 32], strides = [1, 1]} : vector<8x96xf32> to vector<8x32xf32>
    %677 = arith.mulf %666, %676 : vector<8x32xf32>
    %678 = arith.addf %675, %677 : vector<8x32xf32>
    %679 = math.tanh %678 : vector<8x32xf32>
    %cst_153 = arith.constant 1.000000e+00 : f32
    %680 = vector.broadcast %cst_153 : f32 to vector<8x32xf32>
    %681 = arith.subf %680, %674 : vector<8x32xf32>
    %682 = arith.mulf %681, %679 : vector<8x32xf32>
    %683 = arith.mulf %674, %645 : vector<8x32xf32>
    %684 = arith.addf %682, %683 : vector<8x32xf32>
    %685 = arith.index_cast %653 : i32 to index
    %c0_154 = arith.constant 0 : index
    %686 = vector.load %arg18[%685, %c0_154] : memref<64x96xf32, #tpu.memory_space<vmem>>, vector<8x96xf32>
    %cst_155 = arith.constant dense<0.000000e+00> : vector<8x96xf32>
    %687 = tpu.matmul %648, %23, %cst_155 {dimension_numbers = #tpu.dot_dimension_numbers<[1], [0], [0], [1], [0, 0, 1, 1], [], []>} : vector<8x32xf32>, vector<32x96xf32>, vector<8x96xf32> -> vector<8x96xf32>
    %688 = vector.broadcast %24 : vector<1x96xf32> to vector<8x96xf32>
    %689 = arith.addf %687, %688 : vector<8x96xf32>
    %690 = vector.extract_strided_slice %686 {offsets = [0, 0], sizes = [8, 32], strides = [1, 1]} : vector<8x96xf32> to vector<8x32xf32>
    %691 = vector.extract_strided_slice %689 {offsets = [0, 0], sizes = [8, 32], strides = [1, 1]} : vector<8x96xf32> to vector<8x32xf32>
    %692 = arith.addf %690, %691 : vector<8x32xf32>
    %693 = arith.negf %692 : vector<8x32xf32>
    %694 = math.exp %693 : vector<8x32xf32>
    %cst_156 = arith.constant 1.000000e+00 : f32
    %695 = vector.broadcast %cst_156 : f32 to vector<8x32xf32>
    %696 = arith.addf %695, %694 : vector<8x32xf32>
    %697 = arith.divf %695, %696 : vector<8x32xf32>
    %698 = vector.extract_strided_slice %686 {offsets = [0, 32], sizes = [8, 32], strides = [1, 1]} : vector<8x96xf32> to vector<8x32xf32>
    %699 = vector.extract_strided_slice %689 {offsets = [0, 32], sizes = [8, 32], strides = [1, 1]} : vector<8x96xf32> to vector<8x32xf32>
    %700 = arith.addf %698, %699 : vector<8x32xf32>
    %701 = arith.negf %700 : vector<8x32xf32>
    %702 = math.exp %701 : vector<8x32xf32>
    %cst_157 = arith.constant 1.000000e+00 : f32
    %703 = vector.broadcast %cst_157 : f32 to vector<8x32xf32>
    %704 = arith.addf %703, %702 : vector<8x32xf32>
    %705 = arith.divf %703, %704 : vector<8x32xf32>
    %706 = vector.extract_strided_slice %686 {offsets = [0, 64], sizes = [8, 32], strides = [1, 1]} : vector<8x96xf32> to vector<8x32xf32>
    %707 = vector.extract_strided_slice %689 {offsets = [0, 64], sizes = [8, 32], strides = [1, 1]} : vector<8x96xf32> to vector<8x32xf32>
    %708 = arith.mulf %697, %707 : vector<8x32xf32>
    %709 = arith.addf %706, %708 : vector<8x32xf32>
    %710 = math.tanh %709 : vector<8x32xf32>
    %cst_158 = arith.constant 1.000000e+00 : f32
    %711 = vector.broadcast %cst_158 : f32 to vector<8x32xf32>
    %712 = arith.subf %711, %705 : vector<8x32xf32>
    %713 = arith.mulf %712, %710 : vector<8x32xf32>
    %714 = arith.mulf %705, %648 : vector<8x32xf32>
    %715 = arith.addf %713, %714 : vector<8x32xf32>
    %716 = vector.broadcast %c7_i32_145 : i32 to vector<8x1xi32>
    %717 = arith.cmpi slt, %716, %20 : vector<8x1xi32>
    %718 = vector.broadcast %649 : i32 to vector<8x1xi32>
    %719 = arith.cmpi slt, %718, %20 : vector<8x1xi32>
    %cst_159 = arith.constant 0.000000e+00 : f32
    %720 = vector.shape_cast %717 : vector<8x1xi1> to vector<8x1xi1>
    %721 = vector.broadcast %720 : vector<8x1xi1> to vector<8x32xi1>
    %722 = vector.broadcast %cst_159 : f32 to vector<8x32xf32>
    %723 = arith.select %721, %684, %722 : vector<8x32xi1>, vector<8x32xf32>
    %724 = arith.index_cast %651 : i32 to index
    %c0_160 = arith.constant 0 : index
    %725 = vector.load %arg14[%724, %c0_160] : memref<64x32xf32, #tpu.memory_space<vmem>>, vector<8x32xf32>
    tpu.vector_store %arg14[%724, %c0_160], %723 {strides = array<i32>} : memref<64x32xf32, #tpu.memory_space<vmem>>, vector<8x32xf32>,
    %cst_161 = arith.constant 0.000000e+00 : f32
    %726 = vector.shape_cast %719 : vector<8x1xi1> to vector<8x1xi1>
    %727 = vector.broadcast %726 : vector<8x1xi1> to vector<8x32xi1>
    %728 = vector.broadcast %cst_161 : f32 to vector<8x32xf32>
    %729 = arith.select %727, %715, %728 : vector<8x32xi1>, vector<8x32xf32>
    %730 = arith.index_cast %653 : i32 to index
    %c0_162 = arith.constant 0 : index
    %731 = vector.load %arg15[%730, %c0_162] : memref<64x32xf32, #tpu.memory_space<vmem>>, vector<8x32xf32>
    tpu.vector_store %arg15[%730, %c0_162], %729 {strides = array<i32>} : memref<64x32xf32, #tpu.memory_space<vmem>>, vector<8x32xf32>,
    %732 = vector.shape_cast %717 : vector<8x1xi1> to vector<8x1xi1>
    %733 = vector.broadcast %732 : vector<8x1xi1> to vector<8x32xi1>
    %734 = arith.select %733, %684, %645 : vector<8x32xi1>, vector<8x32xf32>
    %735 = vector.shape_cast %719 : vector<8x1xi1> to vector<8x1xi1>
    %736 = vector.broadcast %735 : vector<8x1xi1> to vector<8x32xi1>
    %737 = arith.select %736, %715, %648 : vector<8x32xi1>, vector<8x32xf32>
    %c8_i32_163 = arith.constant 8 : i32
    %738 = tpu.concatenate %734, %737 in 1 : vector<8x32xf32>, vector<8x32xf32> -> vector<8x64xf32>
    %c0_164 = arith.constant 0 : index
    %c0_165 = arith.constant 0 : index
    %739 = vector.load %arg12[%c0_164, %c0_165] : memref<64x32xf32, #tpu.memory_space<vmem>>, vector<64x32xf32>
    %cst_166 = arith.constant dense<0.000000e+00> : vector<8x32xf32>
    %740 = tpu.matmul %738, %739, %cst_166 {dimension_numbers = #tpu.dot_dimension_numbers<[1], [0], [0], [1], [0, 0, 1, 1], [], []>} : vector<8x64xf32>, vector<64x32xf32>, vector<8x32xf32> -> vector<8x32xf32>
    %c0_167 = arith.constant 0 : index
    %c0_168 = arith.constant 0 : index
    %741 = vector.load %arg13[%c0_167, %c0_168] : memref<1x32xf32, #tpu.memory_space<vmem>>, vector<1x32xf32>
    %742 = vector.broadcast %741 : vector<1x32xf32> to vector<8x32xf32>
    %743 = arith.addf %740, %742 : vector<8x32xf32>
    %744 = math.tanh %743 : vector<8x32xf32>
    %c0_169 = arith.constant 0 : index
    %c0_170 = arith.constant 0 : index
    %745 = vector.load %arg16[%c0_169, %c0_170] : memref<8x32xf32, #tpu.memory_space<vmem>>, vector<8x32xf32>
    tpu.vector_store %arg16[%c0_169, %c0_170], %744 {strides = array<i32>} : memref<8x32xf32, #tpu.memory_space<vmem>>, vector<8x32xf32>,
    return
  }
  func.func @transform_0(%arg0: i32) -> (i32, i32) {
    %c0_i32 = arith.constant 0 : i32
    %c0_i32_0 = arith.constant 0 : i32
    %c0_i32_1 = arith.constant 0 : i32
    return %c0_i32, %c0_i32_0 : i32, i32
  }
  func.func @transform_1(%arg0: i32) -> (i32, i32) {
    %c0_i32 = arith.constant 0 : i32
    %c0_i32_0 = arith.constant 0 : i32
    %c0_i32_1 = arith.constant 0 : i32
    return %c0_i32, %c0_i32_0 : i32, i32
  }
  func.func @transform_2(%arg0: i32) -> (i32, i32) {
    %c0_i32 = arith.constant 0 : i32
    %c0_i32_0 = arith.constant 0 : i32
    %c0_i32_1 = arith.constant 0 : i32
    return %c0_i32, %c0_i32_0 : i32, i32
  }
  func.func @transform_3(%arg0: i32) -> (i32, i32) {
    %c0_i32 = arith.constant 0 : i32
    %c0_i32_0 = arith.constant 0 : i32
    %c0_i32_1 = arith.constant 0 : i32
    return %c0_i32, %c0_i32_0 : i32, i32
  }
  func.func @transform_4(%arg0: i32) -> (i32, i32) {
    %c0_i32 = arith.constant 0 : i32
    %c0_i32_0 = arith.constant 0 : i32
    %c0_i32_1 = arith.constant 0 : i32
    return %c0_i32, %c0_i32_0 : i32, i32
  }
  func.func @transform_5(%arg0: i32) -> (i32, i32) {
    %c0_i32 = arith.constant 0 : i32
    %c0_i32_0 = arith.constant 0 : i32
    %c0_i32_1 = arith.constant 0 : i32
    return %c0_i32, %c0_i32_0 : i32, i32
  }
  func.func @transform_6(%arg0: i32) -> (i32, i32) {
    %c0_i32 = arith.constant 0 : i32
    %c0_i32_0 = arith.constant 0 : i32
    %c0_i32_1 = arith.constant 0 : i32
    return %c0_i32, %c0_i32_0 : i32, i32
  }
  func.func @transform_7(%arg0: i32) -> (i32, i32) {
    %c0_i32 = arith.constant 0 : i32
    %c0_i32_0 = arith.constant 0 : i32
    %c0_i32_1 = arith.constant 0 : i32
    return %c0_i32, %c0_i32_0 : i32, i32
  }
  func.func @transform_8(%arg0: i32) -> (i32, i32) {
    %c0_i32 = arith.constant 0 : i32
    %c0_i32_0 = arith.constant 0 : i32
    %c0_i32_1 = arith.constant 0 : i32
    return %c0_i32, %c0_i32_0 : i32, i32
  }
  func.func @transform_9(%arg0: i32) -> (i32, i32) {
    %c0_i32 = arith.constant 0 : i32
    %c0_i32_0 = arith.constant 0 : i32
    %c0_i32_1 = arith.constant 0 : i32
    return %c0_i32, %c0_i32_0 : i32, i32
  }
  func.func @transform_10(%arg0: i32) -> (i32, i32) {
    %c0_i32 = arith.constant 0 : i32
    %c0_i32_0 = arith.constant 0 : i32
    %c0_i32_1 = arith.constant 0 : i32
    return %c0_i32, %c0_i32_0 : i32, i32
  }
  func.func @transform_11(%arg0: i32) -> (i32, i32) {
    %c0_i32 = arith.constant 0 : i32
    %c0_i32_0 = arith.constant 0 : i32
    %c0_i32_1 = arith.constant 0 : i32
    return %c0_i32, %c0_i32_0 : i32, i32
  }
  func.func @transform_12(%arg0: i32) -> (i32, i32) {
    %c0_i32 = arith.constant 0 : i32
    %c0_i32_0 = arith.constant 0 : i32
    %c0_i32_1 = arith.constant 0 : i32
    return %c0_i32, %c0_i32_0 : i32, i32
  }
  func.func @transform_13(%arg0: i32) -> (i32, i32) {
    %c0_i32 = arith.constant 0 : i32
    %c0_i32_0 = arith.constant 0 : i32
    %c0_i32_1 = arith.constant 0 : i32
    return %c0_i32, %c0_i32_0 : i32, i32
  }
  func.func @transform_14(%arg0: i32) -> (i32, i32) {
    %c0_i32 = arith.constant 0 : i32
    %c0_i32_0 = arith.constant 0 : i32
    %c0_i32_1 = arith.constant 0 : i32
    return %c0_i32, %c0_i32_0 : i32, i32
  }
  func.func @transform_15(%arg0: i32) -> (i32, i32) {
    %c0_i32 = arith.constant 0 : i32
    %c0_i32_0 = arith.constant 0 : i32
    %c0_i32_1 = arith.constant 0 : i32
    return %c0_i32, %c0_i32_0 : i32, i32
  }
}

</mosaic_0001>

<bundles_post_ra>
// kernel: tpu_custom_call.1
= control target key start
LH: loop header
LB: loop body
LE: loop exit
PB: predicated region body
PF: predicated region fallthrough
CT: control target
= control target key end

     0   :  { %vm138_vm0 = vcmask 1041408   ;;  %v3085_v2 = vmov 0   ;;  %s3991_s0 = inlined_call_operand.vmem [shape: s32[64,1], index: 0, kind: input, shape index: {}]   ;;  %s3992_s1 = inlined_call_operand.vmem [shape: s32[8,1], index: 1, kind: input, shape index: {}]   ;;  %s3993_s2 = inlined_call_operand.vmem [shape: f32[50,32], index: 2, kind: input, shape index: {}]   ;;  %s3994_s3 = inlined_call_operand.vmem [shape: f32[32,96], index: 3, kind: input, shape index: {}]   ;;  %s3995_s4 = inlined_call_operand.vmem [shape: f32[32,96], index: 4, kind: input, shape index: {}]   ;;  %s3996_s5 = inlined_call_operand.vmem [shape: f32[1,96], index: 5, kind: input, shape index: {}]   ;;  %s3997_s6 = inlined_call_operand.vmem [shape: f32[1,96], index: 6, kind: input, shape index: {}]   ;;  %s3998_s7 = inlined_call_operand.vmem [shape: f32[32,96], index: 7, kind: input, shape index: {}]   ;;  %s3999_s8 = inlined_call_operand.vmem [shape: f32[32,96], index: 8, kind: input, shape index: {}]   ;;  %s4000_s9 = inlined_call_operand.vmem [shape: f32[1,96], index: 9, kind: input, shape index: {}]   ;;  %s4001_s10 = inlined_call_operand.vmem [shape: f32[1,96], index: 10, kind: input, shape index: {}]   ;;  %s4002_s11 = inlined_call_operand.vmem [shape: f32[64,32], index: 11, kind: input, shape index: {}]   ;;  %s4003_s12 = inlined_call_operand.vmem [shape: f32[1,32], index: 12, kind: input, shape index: {}]   ;;  %s4004_s13 = inlined_call_operand.vmem [shape: f32[64,32], index: 13, kind: output, shape index: {0}]   ;;  %s4005_s14 = inlined_call_operand.vmem [shape: f32[64,32], index: 14, kind: output, shape index: {1}]   ;;  %s4006_s15 = inlined_call_operand.hbm [shape: f32[8,32], index: 15, kind: output, shape index: {2}]  }
   0x1   :  { %v50_v0 = vld [vmem:[%s3991_s0 + $0x10] sm:$0xff]  ;;  %v48_v1 = vld [vmem:[%s3991_s0] sm:$0xff]  ;;  %2954 = vset.pattern.permute.xlu1 %v3085_v2  ;;  %2953 = vset.pattern.permute.xlu0 %v3085_v2  ;;  %v51_v4 = vld [vmem:[%s3991_s0 + $0x18] sm:$0xff] }
   0x2   :  { %65 = vperm.xlu1 %2954, %v50_v0   ;;  %59 = vperm.xlu0 %2953, %v48_v1   ;;  %v112_v3 = vld [vmem:[%s3993_s2 + $0x30] sm:$0x3]  ;;  %v49_v5 = vld [vmem:[%s3991_s0 + $0x8] sm:$0xff]  ;;  %v110_v7 = vld [vmem:[%s3993_s2 + $0x20] sm:$0xff] }
   0x3   :  { %2678 = vmatprep.subr.msk.mxu0 %vm138_vm0, %v112_v3  ;;  %v111_v6 = vld [vmem:[%s3993_s2 + $0x28] sm:$0xff] }
   0x4   :  { %2679 = vmatpush3.msk.msra.mxu0 %vm138_vm0, %v112_v3 }
   0x5   :  { %2680 = vmatprep.subr.mxu0 %v111_v6 }
   0x6   :  { %21 = vsyncpa [#allocation5], 0  ;;  %68 = vperm.xlu1 %2954, %v51_v4   ;;  %62 = vperm.xlu0 %2953, %v49_v5   ;;  %v53_v8 = vld [vmem:[%s3991_s0 + $0x28] sm:$0xff]  ;;  %v52_v9 = vld [vmem:[%s3991_s0 + $0x20] sm:$0xff]  ;;  %v56_v20 = vlaneseq  ;;  %vm113_vm1 = vcmask 408576   ;;  %v3086_v24 = vmov 0.0  }
   0x7   :  { %2681 = vmatpush3.msra.mxu0 %v111_v6  ;;  %v109_v10 = vld [vmem:[%s3993_s2 + $0x18] sm:$0xff]  ;;  %v108_v11 = vld [vmem:[%s3993_s2 + $0x10] sm:$0xff]  ;;  %v107_v14 = vld [vmem:[%s3993_s2 + $0x8] sm:$0xff]  ;;  %vm258_vm10 = vcmask 261120   ;;  %vm3087_vm11 = vmmov 0   ;;  %vm388_vm12 = vcmask 785408  }
   0x8   :  { %2682 = vmatprep.subr.mxu0 %v110_v7  ;;  %v55_v12 = vld [vmem:[%s3991_s0 + $0x38] sm:$0xff]  ;;  %v54_v13 = vld [vmem:[%s3991_s0 + $0x30] sm:$0xff]  ;;  %v106_v15 = vld [vmem:[%s3993_s2] sm:$0xff]  ;;  %v57_v21 = vand.u32 127, %v56_v20  ;;  %s3090_s18 = smov [#allocation4]  }
   0x9   :  { %2683 = vmatpush3.msra.mxu0 %v110_v7  ;;  %v250_v16 = vld [vmem:[%s3994_s3 + $0x18] sm:$0xff]  ;;  %v249_v17 = vld [vmem:[%s3994_s3 + $0x10] sm:$0xff]  ;;  %v248_v18 = vld [vmem:[%s3994_s3 + $0x8] sm:$0xff]  ;;  %s2455_s19 = sshll.u32 %s3090_s18, 4  ;;  %s2456_s19 = int_to_ptr.vmem [resolvable:$true] %s2455_s19 }
   0xa   :  { %74 = vperm.xlu1 %2954, %v53_v8   ;;  %71 = vperm.xlu0 %2953, %v52_v9   ;;  %v247_v19 = vld [vmem:[%s3994_s3] sm:$0xff]  ;;  %v400_v39 = vld [vmem:[%s3998_s7 + $0x18] sm:$0xff]  ;;  %v3260_v44 = vld [vmem:[%s3995_s4 + $0x10] sm:$0xff]  ;;  %s3063_s0 = scalar_lea.vmem %s2456_s19, 128  ;;  %p3068_p1 = scmp.lt.s32.totalorder %s2456_s19, %s2456_s19 }
   0xb   :  { %2684 = vmatprep.subr.mxu0 %v109_v10  ;;  %2939 = vmatprep.subr.mxu1 %v250_v16  ;;  %v3253_v42 = vld [vmem:[%s3995_s4 + $0x18] sm:$0xff]  ;;  %v3267_v46 = vld [vmem:[%s3995_s4 + $0x8] sm:$0xff]  ;;  %v3276_v48 = vld [vmem:[%s3995_s4] sm:$0xff]  ;;  %p3064_p0 = scmp.ne.s32.totalorder %s2456_s19, %s3063_s0  ;;  %p3069_p2 = scmp.lt.s32.totalorder %s3063_s0, %s3063_s0 }
   0xc   :  { %2685 = vmatpush3.msra.mxu0 %v109_v10  ;;  %2943 = vmatpush3.msra.mxu1 %v250_v16  ;;  %v3287_v50 = vld [vmem:[%s3999_s8 + $0x18] sm:$0xff]  ;;  %v399_v51 = vld [vmem:[%s3998_s7 + $0x10] sm:$0xff]  ;;  %v398_v55 = vld [vmem:[%s3998_s7 + $0x8] sm:$0xff] }
   0xd   :  { %2686 = vmatprep.subr.mxu0 %v108_v11  ;;  %2940 = vmatprep.subr.mxu1 %v249_v17  ;;  %v3298_v53 = vld [vmem:[%s3999_s8 + $0x10] sm:$0xff]  ;;  %v3309_v56 = vld [vmem:[%s3999_s8 + $0x8] sm:$0xff]  ;;  %v397_v57 = vld [vmem:[%s3998_s7] sm:$0xff]  ;;  %p3070_p3 = por %p3069_p2, %p3068_p1 }
   0xe   :  { %80 = vperm.xlu1 %2954, %v55_v12   ;;  %77 = vperm.xlu0 %2953, %v54_v13   ;;  %v3321_v58 = vld [vmem:[%s3999_s8] sm:$0xff] }
   0xf   :  { %2687 = vmatpush3.msra.mxu0 %v108_v11  ;;  %2944 = vmatpush3.msra.mxu1 %v249_v17  ;;  %v2484_v59 = vld [vmem:[%s3996_s5] ss:$0 sm:$0xff]  ;;  %s3088_s5 = smov 64   ;;  %p3071_p4 = pnand %p3070_p3, %p3064_p0 }
  0x10   :  { %2688 = vmatprep.subr.mxu0 %v107_v14  ;;  %2941 = vmatprep.subr.mxu1 %v248_v18  ;;  %v3367_v5 = vld [vmem:[%s3997_s6] ss:$0 sm:$0xff] }
  0x11   :  { %2689 = vmatpush3.msra.mxu0 %v107_v14  ;;  %2945 = vmatpush3.msra.mxu1 %v248_v18 }
  0x12   :  { %2690 = vmatprep.subr.mxu0 %v106_v15  ;;  %2942 = vmatprep.subr.mxu1 %v247_v19 }
  0x13   :  { %2691 = vmatpush3.msra.mxu0 %v106_v15  ;;  %2946 = vmatpush3.msra.mxu1 %v247_v19 }
  0x14   :  { %2704 = vmatprep.subr.mxu0 %v250_v16  ;;  %2724 = vmatprep.subr.mxu1 %v400_v39 }
  0x7d   :  { %v66_v22 = vpop.permute.xlu1 %65  ;;  %v60_v23 = vpop.permute.xlu0 %59 }
  0x7e   :  { %vm82_vm2 = vcmp.eq.s32.totalorder %v60_v23, %v57_v21  ;;  %vm84_vm3 = vcmp.eq.s32.totalorder %v66_v22, %v57_v21 }
  0x7f   :  { %v2467_v25 = vsel %vm82_vm2, 1.0, %v3086_v24  ;;  %v2469_v28 = vsel %vm84_vm3, 1.0, %v3086_v24 }
  0x80   :  { %2692 = vmatprep.mubr.msk.f32.mxu0 %vm113_vm1, %v2467_v25 }
  0x81   :  { %v69_v26 = vpop.permute.xlu1 %68  ;;  %v63_v27 = vpop.permute.xlu0 %62 }
  0x82   :  { %vm83_vm4 = vcmp.eq.s32.totalorder %v63_v27, %v57_v21  ;;  %vm85_vm5 = vcmp.eq.s32.totalorder %v69_v26, %v57_v21 }
  0x83   :  { %v2468_v29 = vsel %vm83_vm4, 1.0, %v3086_v24  ;;  %v2470_v32 = vsel %vm85_vm5, 1.0, %v3086_v24 }
  0x84   :  { %2693 = vmatmul.mubr.msk.f32.vlgmr.msra.gmra.mxu0 %vm113_vm1, %v2468_v29 }
  0x85   :  { %v75_v30 = vpop.permute.xlu1 %74  ;;  %2695 = vmatprep.mubr.msk.f32.mxu0 %vm113_vm1, %v2469_v28  ;;  %v72_v31 = vpop.permute.xlu0 %71  ;;  %2705 = vmatpush3.msra.mxu0 %v250_v16 }
  0x86   :  { %vm86_vm6 = vcmp.eq.s32.totalorder %v72_v31, %v57_v21  ;;  %2706 = vmatprep.subr.mxu0 %v249_v17  ;;  %vm87_vm7 = vcmp.eq.s32.totalorder %v75_v30, %v57_v21 }
  0x87   :  { %v2471_v33 = vsel %vm86_vm6, 1.0, %v3086_v24  ;;  %2707 = vmatpush3.msra.mxu0 %v249_v17  ;;  %v2472_v36 = vsel %vm87_vm7, 1.0, %v3086_v24  ;;  %v3378_v17 = vld [vmem:[%s4001_s10] ss:$0 sm:$0xff] }
  0x88   :  { %2696 = vmatmul.mubr.msk.f32.gmra.mxu0 %vm113_vm1, %v2470_v32  ;;  %2708 = vmatprep.subr.mxu0 %v248_v18 }
  0x89   :  { %v81_v34 = vpop.permute.xlu1 %80  ;;  %2698 = vmatprep.mubr.msk.f32.mxu0 %vm113_vm1, %v2471_v33  ;;  %v78_v35 = vpop.permute.xlu0 %77  ;;  %2709 = vmatpush3.msra.mxu0 %v248_v18  ;;  %v2493_v18 = vld [vmem:[%s4000_s9] ss:$0 sm:$0xff] }
  0x8a   :  { %vm88_vm8 = vcmp.eq.s32.totalorder %v78_v35, %v57_v21  ;;  %2710 = vmatprep.subr.mxu0 %v247_v19  ;;  %vm89_vm9 = vcmp.eq.s32.totalorder %v81_v34, %v57_v21 }
  0x8b   :  { %v2473_v37 = vsel %vm88_vm8, 1.0, %v3086_v24  ;;  %2711 = vmatpush3.msra.mxu0 %v247_v19  ;;  %v2474_v38 = vsel %vm89_vm9, 1.0, %v3086_v24 }
  0x8c   :  { %2699 = vmatmul.mubr.msk.f32.gmra.mxu0 %vm113_vm1, %v2472_v36  ;;  %2744 = vmatprep.subr.mxu0 %v3086_v24 }
  0x8d   :  { %2701 = vmatprep.mubr.msk.f32.mxu0 %vm113_vm1, %v2473_v37 }
  0x90   :  { %2702 = vmatmul.mubr.msk.f32.gmra.mxu0 %vm113_vm1, %v2474_v38 }
 0x144   :  { %v2694_v40 = vpop.f32.mrf.mxu0 }
 0x146   :  { %v208_v41 = vpop.f32.mrf.mxu0 }
 0x147   :  { %2712 = vmatprep.mubr.msk.f32.mxu0 %vm258_vm10, %v208_v41 }
 0x148   :  { %v2697_v43 = vpop.f32.mrf.mxu0  ;;  %2713 = vmatmul.mubr.msk.f32.vlgmr.msra.gmra.mxu0 %vm258_vm10, %v2694_v40 }
 0x149   :  { %2745 = vmatpush3.msra.mxu0 %v3253_v42 }
 0x14a   :  { %2746 = vmatprep.subr.mxu0 %v3086_v24  ;;  %v218_v45 = vpop.f32.mrf.mxu0 }
 0x14b   :  { %2747 = vmatpush3.msra.mxu0 %v3260_v44  ;;  %2715 = vmatprep.mubr.msk.f32.mxu0 %vm258_vm10, %v218_v45 }
 0x14c   :  { %2748 = vmatprep.subr.mxu0 %v3086_v24  ;;  %v2700_v47 = vpop.f32.mrf.mxu0  ;;  %2716 = vmatmul.mubr.msk.f32.gmra.mxu0 %vm258_vm10, %v2697_v43 }
 0x14d   :  { %2749 = vmatpush3.msra.mxu0 %v3267_v46  ;;  %2752 = vmatprep.mubr.msk.f32.mxu0 %vm3087_vm11, %v3086_v24 }
 0x14e   :  { %2750 = vmatprep.subr.mxu0 %v3086_v24  ;;  %v228_v49 = vpop.f32.mrf.mxu0 }
 0x14f   :  { %2751 = vmatpush3.msra.mxu0 %v3276_v48  ;;  %2718 = vmatprep.mubr.msk.f32.mxu1 %vm258_vm10, %v228_v49 }
 0x150   :  { %2755 = vmatprep.subr.mxu0 %v3086_v24  ;;  %v2703_v52 = vpop.f32.mrf.mxu0  ;;  %2719 = vmatmul.mubr.msk.f32.vlgmr.msra.gmra.mxu1 %vm258_vm10, %v2700_v47 }
 0x151   :  { %2753 = vmatmul.mubr.f32.vlgmr.msra.gmra.mxu0 %v3086_v24  ;;  %2725 = vmatpush3.msra.mxu1 %v400_v39 }
 0x152   :  { %2756 = vmatpush3.msra.mxu0 %v3287_v50  ;;  %v238_v54 = vpop.f32.mrf.mxu0  ;;  %2726 = vmatprep.subr.mxu1 %v399_v51 }
 0x153   :  { %2757 = vmatprep.subr.mxu0 %v3086_v24  ;;  %2721 = vmatprep.mubr.msk.f32.mxu1 %vm258_vm10, %v238_v54 }
 0x154   :  { %2758 = vmatpush3.msra.mxu0 %v3298_v53  ;;  %2727 = vmatpush3.msra.mxu1 %v399_v51 }
 0x155   :  { %2759 = vmatprep.subr.mxu0 %v3086_v24  ;;  %2722 = vmatmul.mubr.msk.f32.gmra.mxu1 %vm258_vm10, %v2703_v52 }
 0x156   :  { %2728 = vmatprep.subr.mxu1 %v398_v55  ;;  %2760 = vmatpush3.msra.mxu0 %v3309_v56 }
 0x157   :  { %2729 = vmatpush3.msra.mxu1 %v398_v55  ;;  %2732 = vmatprep.mubr.msk.f32.mxu1 %vm258_vm10, %v208_v41  ;;  %v3397_v55 = vld [vmem:[%s3992_s1] sm:$0xff]  ;;  %s3089_s1 = smov 96  }
 0x158   :  { %2761 = vmatprep.subr.mxu0 %v3086_v24  ;;  %2730 = vmatprep.subr.mxu1 %v397_v57  ;;  %vm742_vm13 = vcmp.gt.s32.totalorder %v3397_v55, 0  ;;  %vm743_vm14 = vcmp.gt.s32.totalorder %v3397_v55, 7  ;;  %vm967_vm1 = vcmp.gt.s32.totalorder %v3397_v55, 1  ;;  %vm968_vm2 = vcmp.gt.s32.totalorder %v3397_v55, 6 }
 0x159   :  { %2762 = vmatpush3.msra.mxu0 %v3321_v58  ;;  %2763 = vmatprep.mubr.msk.f32.mxu0 %vm3087_vm11, %v3086_v24  ;;  %vm1201_vm5 = vcmp.gt.s32.totalorder %v3397_v55, 2  ;;  %vm1202_vm6 = vcmp.gt.s32.totalorder %v3397_v55, 5  ;;  %vm1435_vm9 = vcmp.gt.s32.totalorder %v3397_v55, 3 }
 0x15a   :  { %2731 = vmatpush3.msra.mxu1 %v397_v57  ;;  %2764 = vmatmul.mubr.f32.vlgmr.msra.gmra.mxu0 %v3086_v24 }
 0x15b   :  { %2733 = vmatmul.mubr.msk.f32.vlgmr.msra.gmra.mxu1 %vm258_vm10, %v2694_v40  ;;  %2766 = vmatprep.subr.mxu1 %v3086_v24 }
 0x15c   :  { %2735 = vmatprep.mubr.msk.f32.mxu1 %vm258_vm10, %v218_v45  ;;  %2767 = vmatpush3.msra.mxu1 %v3253_v42 }
 0x15d   :  { %2768 = vmatprep.subr.mxu1 %v3086_v24  ;;  %2777 = vmatprep.subr.mxu0 %v3086_v24 }
 0x15e   :  { %2769 = vmatpush3.msra.mxu1 %v3260_v44  ;;  %2778 = vmatpush3.msra.mxu0 %v3287_v50 }
 0x15f   :  { %2736 = vmatmul.mubr.msk.f32.gmra.mxu1 %vm258_vm10, %v2697_v43  ;;  %2770 = vmatprep.subr.mxu1 %v3086_v24 }
 0x160   :  { %2738 = vmatprep.mubr.msk.f32.mxu1 %vm258_vm10, %v228_v49  ;;  %2771 = vmatpush3.msra.mxu1 %v3267_v46 }
 0x161   :  { %2772 = vmatprep.subr.mxu1 %v3086_v24  ;;  %2779 = vmatprep.subr.mxu0 %v3086_v24 }
 0x162   :  { %2773 = vmatpush3.msra.mxu1 %v3276_v48  ;;  %2780 = vmatpush3.msra.mxu0 %v3298_v53 }
 0x163   :  { %2739 = vmatmul.mubr.msk.f32.gmra.mxu1 %vm258_vm10, %v2700_v47  ;;  %2781 = vmatprep.subr.mxu0 %v3086_v24 }
 0x164   :  { %2741 = vmatprep.mubr.msk.f32.mxu1 %vm258_vm10, %v238_v54  ;;  %2782 = vmatpush3.msra.mxu0 %v3309_v56 }
 0x165   :  { %2783 = vmatprep.subr.mxu0 %v3086_v24  ;;  %2785 = vmatprep.mubr.msk.f32.mxu0 %vm3087_vm11, %v3086_v24 }
 0x166   :  { %2784 = vmatpush3.msra.mxu0 %v3321_v58  ;;  %2788 = vmatprep.subr.mxu1 %v3086_v24 }
 0x167   :  { %2742 = vmatmul.mubr.msk.f32.gmra.mxu1 %vm258_vm10, %v2703_v52  ;;  %2799 = vmatprep.subr.mxu0 %v3086_v24 }
 0x168   :  { %2774 = vmatprep.mubr.msk.f32.mxu1 %vm3087_vm11, %v3086_v24 }
 0x208   :  { %v2714_v60 = vpop.f32.mrf.mxu0 }
 0x209   :  { %v355_v61 = vadd.f32 %v2714_v60, %v2484_v59 }
 0x20a   :  { %v349_v62 = vpop.f32.mrf.mxu0 }
 0x20b   :  { %390 = vst.msk [vmem:[#allocation2 + $0x8] sm:$0xff] %vm388_vm12, %v355_v61  ;;  %v350_v63 = vadd.f32 %v2484_v59, %v349_v62  ;;  %v744_v61 = vsel %vm742_vm13, 1, %v3085_v2  ;;  %v755_v62 = vsel %vm743_vm14, 1, %v3085_v2 }
 0x20c   :  { %v2717_v0 = vpop.f32.mrf.mxu0 }
 0x20d   :  { %389 = vst.msk [vmem:[#allocation2] sm:$0xff] %vm388_vm12, %v350_v63  ;;  %v365_v1 = vadd.f32 %v2717_v0, %v2484_v59 }
 0x20e   :  { %v359_v3 = vpop.f32.mrf.mxu0 }
 0x20f   :  { %392 = vst.msk [vmem:[#allocation2 + $0x18] sm:$0xff] %vm388_vm12, %v365_v1  ;;  %v360_v4 = vadd.f32 %v2484_v59, %v359_v3 }
 0x210   :  { %v2720_v6 = vpop.f32.mrf.mxu1 }
 0x211   :  { %391 = vst.msk [vmem:[#allocation2 + $0x10] sm:$0xff] %vm388_vm12, %v360_v4  ;;  %v375_v7 = vadd.f32 %v2720_v6, %v2484_v59  ;;  %v608_v8 = vpop.f32.mrf.mxu0 }
 0x212   :  { %v609_v9 = vadd.f32 %v3367_v5, %v608_v8  ;;  %v369_v10 = vpop.f32.mrf.mxu1 }
 0x213   :  { %394 = vst.msk [vmem:[#allocation2 + $0x28] sm:$0xff] %vm388_vm12, %v375_v7  ;;  %v370_v11 = vadd.f32 %v2484_v59, %v369_v10  ;;  %v2754_v12 = vpop.f32.mrf.mxu0 }
 0x214   :  { %620 = vrot.lane.b32.xlu0 %v609_v9, %s3088_s5  ;;  %v532_v39 = vld [vmem:[#allocation2] sm:$0xff] }
 0x215   :  { %393 = vst.msk [vmem:[#allocation2 + $0x20] sm:$0xff] %vm388_vm12, %v370_v11  ;;  %v2723_v13 = vpop.f32.mrf.mxu1  ;;  %v612_v40 = vadd.f32 %v609_v9, %v532_v39 }
 0x216   :  { %v385_v14 = vadd.f32 %v2723_v13, %v2484_v59 }
 0x217   :  { %v379_v15 = vpop.f32.mrf.mxu1  ;;  %v2503_v41 = vmul.f32 -1.442695, %v612_v40 }
 0x218   :  { %396 = vst.msk [vmem:[#allocation2 + $0x38] sm:$0xff] %vm388_vm12, %v385_v14  ;;  %v380_v16 = vadd.f32 %v2484_v59, %v379_v15 }
 0x219   :  { %2955 = vpow2.f32 %v2503_v41 }
 0x21a   :  { %395 = vst.msk [vmem:[#allocation2 + $0x30] sm:$0xff] %vm388_vm12, %v380_v16  ;;  %v712_v19 = vpop.f32.mrf.mxu0 }
 0x21b   :  { %v713_v20 = vadd.f32 %v3378_v17, %v712_v19  ;;  %v2734_v21 = vpop.f32.mrf.mxu1 }
 0x21c   :  { %v480_v22 = vadd.f32 %v2734_v21, %v2493_v18  ;;  %v2765_v23 = vpop.f32.mrf.mxu0 }
 0x21d   :  { %v474_v25 = vpop.f32.mrf.mxu1  ;;  %724 = vrot.lane.b32.xlu1 %v713_v20, %s3088_s5 }
 0x21e   :  { %514 = vst.msk [vmem:[#allocation3 + $0x8] sm:$0xff] %vm388_vm12, %v480_v22  ;;  %v475_v26 = vadd.f32 %v2493_v18, %v474_v25 }
 0x21f   :  { %v2737_v27 = vpop.f32.mrf.mxu1 }
 0x220   :  { %513 = vst.msk [vmem:[#allocation3] sm:$0xff] %vm388_vm12, %v475_v26  ;;  %v490_v28 = vadd.f32 %v2737_v27, %v2493_v18 }
 0x221   :  { %v484_v29 = vpop.f32.mrf.mxu1 }
 0x222   :  { %516 = vst.msk [vmem:[#allocation3 + $0x18] sm:$0xff] %vm388_vm12, %v490_v28  ;;  %v485_v30 = vadd.f32 %v2493_v18, %v484_v29 }
 0x223   :  { %v2740_v31 = vpop.f32.mrf.mxu1 }
 0x224   :  { %515 = vst.msk [vmem:[#allocation3 + $0x10] sm:$0xff] %vm388_vm12, %v485_v30  ;;  %v500_v32 = vadd.f32 %v2740_v31, %v2493_v18 }
 0x225   :  { %v494_v33 = vpop.f32.mrf.mxu1 }
 0x226   :  { %518 = vst.msk [vmem:[#allocation3 + $0x28] sm:$0xff] %vm388_vm12, %v500_v32  ;;  %v495_v34 = vadd.f32 %v2493_v18, %v494_v33  ;;  %v2956_v49 = vpop.eup %2955 }
 0x227   :  { %v2743_v35 = vpop.f32.mrf.mxu1  ;;  %v616_v51 = vadd.f32 1.0, %v2956_v49 }
 0x228   :  { %517 = vst.msk [vmem:[#allocation3 + $0x20] sm:$0xff] %vm388_vm12, %v495_v34  ;;  %v510_v36 = vadd.f32 %v2743_v35, %v2493_v18  ;;  %v768_v34 = vld [vmem:[#allocation2 + $0x8] sm:$0xff] }
 0x229   :  { %v504_v37 = vpop.f32.mrf.mxu1 }
 0x22a   :  { %520 = vst.msk [vmem:[#allocation3 + $0x38] sm:$0xff] %vm388_vm12, %v510_v36  ;;  %v505_v38 = vadd.f32 %v2493_v18, %v504_v37 }
 0x22c   :  { %519 = vst.msk [vmem:[#allocation3 + $0x30] sm:$0xff] %vm388_vm12, %v505_v38  ;;  %vm1436_vm12 = vcmp.gt.s32.totalorder %v3397_v55, 4 }
 0x231   :  { %v639_v43 = vld [vmem:[#allocation3 + $0x38] sm:$0xff] }
 0x232   :  { %v716_v45 = vadd.f32 %v713_v20, %v639_v43 }
 0x233   :  { %v868_v37 = vld [vmem:[#allocation3 + $0x30] sm:$0xff] }
 0x234   :  { %v2505_v47 = vmul.f32 -1.442695, %v716_v45 }
 0x236   :  { %2957 = vpow2.f32 %v2505_v47 }
 0x237   :  { %2959 = vrcp.f32 %v616_v51 }
 0x243   :  { %v2958_v52 = vpop.eup %2957 }
 0x244   :  { %v720_v54 = vadd.f32 1.0, %v2958_v52  ;;  %v2960_v57 = vpop.eup %2959  ;;  %v969_v52 = vsel %vm967_vm1, 1, %v3085_v2 }
 0x245   :  { %v630_v10 = vsub.f32 1.0, %v2960_v57  ;;  %v636_v13 = vmul.f32 0.0, %v2960_v57 }
 0x246   :  { %2961 = vrcp.f32 %v720_v54  ;;  %v981_v54 = vsel %vm968_vm2, 1, %v3085_v2 }
 0x253   :  { %v2962_v63 = vpop.eup %2961 }
 0x254   :  { %v734_v18 = vsub.f32 1.0, %v2962_v63  ;;  %v740_v21 = vmul.f32 0.0, %v2962_v63 }
 0x286   :  { %v621_v59 = vpop.permute.xlu0 %620 }
 0x287   :  { %v623_v60 = vmul.f32 %v2960_v57, %v621_v59 }
 0x289   :  { %625 = vrot.lane.b32.xlu0 %v623_v60, %s3088_s5 }
 0x28d   :  { %746 = vperm.xlu0 %2953, %v744_v61  }
 0x28f   :  { %v725_v0 = vpop.permute.xlu1 %724 }
 0x290   :  { %v727_v1 = vmul.f32 %v2962_v63, %v725_v0 }
 0x291   :  { %757 = vperm.xlu0 %2953, %v755_v62  }
 0x292   :  { %729 = vrot.lane.b32.xlu1 %v727_v1, %s3088_s5 }
 0x2fb   :  { %v626_v3 = vpop.permute.xlu0 %625 }
 0x2fc   :  { %v628_v4 = vadd.f32 %v626_v3, %v532_v39 }
 0x2fe   :  { %2963 = vtanh.f32 %v628_v4 }
 0x304   :  { %v730_v6 = vpop.permute.xlu1 %729 }
 0x305   :  { %v732_v7 = vadd.f32 %v730_v6, %v639_v43 }
 0x307   :  { %2965 = vtanh.f32 %v732_v7 }
 0x308   :  { %v3407_v12 = vpop.permute.xlu0 %746 }
 0x309   :  { %vm748_vm15 = vcmp.eq.s32.totalorder %v3407_v12, 1 }
 0x30b   :  { %v2964_v8 = vpop.eup %2963 }
 0x30c   :  { %632 = vrot.lane.b32.xlu1 %v2964_v8, %s3089_s1  ;;  %v3416_v20 = vpop.permute.xlu0 %757 }
 0x30d   :  { %vm759_vm0 = vcmp.eq.s32.totalorder %v3416_v20, 1 }
 0x314   :  { %v2966_v9 = vpop.eup %2965 }
 0x315   :  { %736 = vrot.lane.b32.xlu1 %v2966_v9, %s3089_s1 }
 0x37e   :  { %v633_v11 = vpop.permute.xlu1 %632 }
 0x37f   :  { %v635_v14 = vmul.f32 %v633_v11, %v630_v10 }
 0x381   :  { %v637_v15 = vadd.f32 %v636_v13, %v635_v14 }
 0x383   :  { %v3412_v16 = vsel %vm748_vm15, %v637_v15, 0.0 }
 0x384   :  { %751 = vrot.lane.b32.xlu0 %v3412_v16, %s3089_s1 }
 0x387   :  { %v737_v19 = vpop.permute.xlu1 %736 }
 0x388   :  { %v739_v22 = vmul.f32 %v737_v19, %v734_v18 }
 0x38a   :  { %v741_v23 = vadd.f32 %v740_v21, %v739_v22 }
 0x38c   :  { %v3421_v25 = vsel %vm759_vm0, %v741_v23, 0.0 }
 0x38d   :  { %762 = vrot.lane.b32.xlu1 %v3421_v25, %s3089_s1 }
 0x3f6   :  { %v752_v26 = vpop.permute.xlu0 %751 }
 0x3f7   :  { %754 = vst.msk [vmem:[%s4004_s13] sm:$0xff] %vm258_vm10, %v752_v26  ;;  %2775 = vmatmul.mubr.msk.f32.vlgmr.msra.gmra.mxu1 %vm258_vm10, %v752_v26 }
 0x3f8   :  { %2789 = vmatpush3.msra.mxu1 %v3253_v42  ;;  %2796 = vmatprep.mubr.msk.f32.mxu1 %vm3087_vm11, %v3086_v24 }
 0x3f9   :  { %2790 = vmatprep.subr.mxu1 %v3086_v24 }
 0x3fa   :  { %2791 = vmatpush3.msra.mxu1 %v3260_v44 }
 0x3fb   :  { %2792 = vmatprep.subr.mxu1 %v3086_v24 }
 0x3fc   :  { %2793 = vmatpush3.msra.mxu1 %v3267_v46 }
 0x3fd   :  { %2794 = vmatprep.subr.mxu1 %v3086_v24 }
 0x3fe   :  { %2795 = vmatpush3.msra.mxu1 %v3276_v48 }
 0x3ff   :  { %v763_v27 = vpop.permute.xlu1 %762  ;;  %2810 = vmatprep.subr.mxu1 %v3086_v24 }
 0x400   :  { %2506 = vst.msk [vmem:[%s4005_s14 + $0x38] sm:$0xff] %vm258_vm10, %v763_v27  ;;  %2786 = vmatmul.mubr.msk.f32.vlgmr.msra.gmra.mxu0 %vm258_vm10, %v763_v27 }
 0x401   :  { %2800 = vmatpush3.msra.mxu0 %v3287_v50  ;;  %2807 = vmatprep.mubr.msk.f32.mxu0 %vm3087_vm11, %v3086_v24 }
 0x402   :  { %2801 = vmatprep.subr.mxu0 %v3086_v24 }
 0x403   :  { %2802 = vmatpush3.msra.mxu0 %v3298_v53 }
 0x404   :  { %2803 = vmatprep.subr.mxu0 %v3086_v24 }
 0x405   :  { %2804 = vmatpush3.msra.mxu0 %v3309_v56 }
 0x406   :  { %2805 = vmatprep.subr.mxu0 %v3086_v24 }
 0x407   :  { %2806 = vmatpush3.msra.mxu0 %v3321_v58 }
 0x408   :  { %2821 = vmatprep.subr.mxu0 %v3086_v24 }
 0x4b7   :  { %v837_v28 = vpop.f32.mrf.mxu1 }
 0x4b8   :  { %v838_v29 = vadd.f32 %v3367_v5, %v837_v28 }
 0x4b9   :  { %v2776_v30 = vpop.f32.mrf.mxu1 }
 0x4ba   :  { %849 = vrot.lane.b32.xlu0 %v838_v29, %s3088_s5  ;;  %v841_v35 = vadd.f32 %v838_v29, %v768_v34 }
 0x4bc   :  { %v2508_v36 = vmul.f32 -1.442695, %v841_v35 }
 0x4be   :  { %2967 = vpow2.f32 %v2508_v36 }
 0x4c0   :  { %v937_v31 = vpop.f32.mrf.mxu0 }
 0x4c1   :  { %v938_v32 = vadd.f32 %v3378_v17, %v937_v31  ;;  %v996_v31 = vld [vmem:[#allocation2 + $0x10] sm:$0xff] }
 0x4c2   :  { %v2787_v33 = vpop.f32.mrf.mxu0 }
 0x4c3   :  { %949 = vrot.lane.b32.xlu1 %v938_v32, %s3088_s5  ;;  %v941_v38 = vadd.f32 %v938_v32, %v868_v37 }
 0x4c5   :  { %v2510_v39 = vmul.f32 -1.442695, %v941_v38 }
 0x4c7   :  { %2969 = vpow2.f32 %v2510_v39 }
 0x4cb   :  { %v2968_v40 = vpop.eup %2967 }
 0x4cc   :  { %v845_v41 = vadd.f32 1.0, %v2968_v40 }
 0x4ce   :  { %2971 = vrcp.f32 %v845_v41 }
 0x4d4   :  { %v2970_v43 = vpop.eup %2969 }
 0x4d5   :  { %v945_v45 = vadd.f32 1.0, %v2970_v43 }
 0x4d7   :  { %2973 = vrcp.f32 %v945_v45 }
 0x4db   :  { %v2972_v47 = vpop.eup %2971 }
 0x4dc   :  { %v859_v4 = vsub.f32 1.0, %v2972_v47  ;;  %v865_v8 = vmul.f32 %v2972_v47, %v3412_v16 }
 0x4e4   :  { %v2974_v57 = vpop.eup %2973 }
 0x4e5   :  { %v959_v13 = vsub.f32 1.0, %v2974_v57  ;;  %v965_v18 = vmul.f32 %v2974_v57, %v3421_v25 }
 0x52c   :  { %v850_v49 = vpop.permute.xlu0 %849 }
 0x52d   :  { %v852_v51 = vmul.f32 %v2972_v47, %v850_v49  ;;  %v1203_v47 = vsel %vm1201_vm5, 1, %v3085_v2  ;;  %v1215_v49 = vsel %vm1202_vm6, 1, %v3085_v2 }
 0x52f   :  { %854 = vrot.lane.b32.xlu0 %v852_v51, %s3088_s5 }
 0x533   :  { %971 = vperm.xlu0 %2953, %v969_v52  }
 0x535   :  { %v950_v59 = vpop.permute.xlu1 %949 }
 0x536   :  { %v952_v60 = vmul.f32 %v2974_v57, %v950_v59 }
 0x537   :  { %983 = vperm.xlu0 %2953, %v981_v54  }
 0x538   :  { %954 = vrot.lane.b32.xlu1 %v952_v60, %s3088_s5 }
 0x5a1   :  { %v855_v61 = vpop.permute.xlu0 %854 }
 0x5a2   :  { %v857_v62 = vadd.f32 %v855_v61, %v768_v34  ;;  %v1099_v34 = vld [vmem:[#allocation3 + $0x28] sm:$0xff] }
 0x5a4   :  { %2975 = vtanh.f32 %v857_v62 }
 0x5aa   :  { %v955_v63 = vpop.permute.xlu1 %954 }
 0x5ab   :  { %v957_v0 = vadd.f32 %v955_v63, %v868_v37 }
 0x5ad   :  { %2977 = vtanh.f32 %v957_v0 }
 0x5ae   :  { %v3467_v7 = vpop.permute.xlu0 %971 }
 0x5af   :  { %vm973_vm3 = vcmp.eq.s32.totalorder %v3467_v7, 1 }
 0x5b1   :  { %v2976_v1 = vpop.eup %2975 }
 0x5b2   :  { %861 = vrot.lane.b32.xlu1 %v2976_v1, %s3089_s1  ;;  %v3481_v15 = vpop.permute.xlu0 %983 }
 0x5b3   :  { %vm985_vm4 = vcmp.eq.s32.totalorder %v3481_v15, 1 }
 0x5ba   :  { %v2978_v3 = vpop.eup %2977 }
 0x5bb   :  { %961 = vrot.lane.b32.xlu1 %v2978_v3, %s3089_s1 }
 0x624   :  { %v862_v6 = vpop.permute.xlu1 %861 }
 0x625   :  { %v864_v9 = vmul.f32 %v862_v6, %v859_v4 }
 0x627   :  { %v3470_v10 = vadd.f32 %v865_v8, %v864_v9 }
 0x629   :  { %v3477_v11 = vsel %vm973_vm3, %v3470_v10, %v3412_v16 }
 0x62a   :  { %998 = vrot.lane.b32.xlu0 %v3477_v11, %s3089_s1 }
 0x62d   :  { %v962_v14 = vpop.permute.xlu1 %961 }
 0x62e   :  { %v964_v19 = vmul.f32 %v962_v14, %v959_v13 }
 0x630   :  { %v3484_v21 = vadd.f32 %v965_v18, %v964_v19 }
 0x632   :  { %v3491_v16 = vsel %vm985_vm4, %v3484_v21, %v3421_v25 }
 0x633   :  { %1101 = vrot.lane.b32.xlu1 %v3491_v16, %s3089_s1 }
 0x69c   :  { %v999_v22 = vpop.permute.xlu0 %998 }
 0x69d   :  { %2797 = vmatmul.mubr.msk.f32.vlgmr.msra.gmra.mxu1 %vm258_vm10, %v999_v22 }
 0x69e   :  { %2811 = vmatpush3.msra.mxu1 %v3253_v42  ;;  %2818 = vmatprep.mubr.msk.f32.mxu1 %vm3087_vm11, %v3086_v24 }
 0x69f   :  { %2812 = vmatprep.subr.mxu1 %v3086_v24 }
 0x6a0   :  { %2813 = vmatpush3.msra.mxu1 %v3260_v44 }
 0x6a1   :  { %2814 = vmatprep.subr.mxu1 %v3086_v24 }
 0x6a2   :  { %2815 = vmatpush3.msra.mxu1 %v3267_v46 }
 0x6a3   :  { %2816 = vmatprep.subr.mxu1 %v3086_v24 }
 0x6a4   :  { %2817 = vmatpush3.msra.mxu1 %v3276_v48 }
 0x6a5   :  { %v1102_v23 = vpop.permute.xlu1 %1101  ;;  %2832 = vmatprep.subr.mxu1 %v3086_v24 }
 0x6a6   :  { %2808 = vmatmul.mubr.msk.f32.vlgmr.msra.gmra.mxu0 %vm258_vm10, %v1102_v23 }
 0x6a7   :  { %2822 = vmatpush3.msra.mxu0 %v3287_v50  ;;  %2829 = vmatprep.mubr.msk.f32.mxu0 %vm3087_vm11, %v3086_v24 }
 0x6a8   :  { %2823 = vmatprep.subr.mxu0 %v3086_v24 }
 0x6a9   :  { %2824 = vmatpush3.msra.mxu0 %v3298_v53 }
 0x6aa   :  { %2825 = vmatprep.subr.mxu0 %v3086_v24 }
 0x6ab   :  { %2826 = vmatpush3.msra.mxu0 %v3309_v56 }
 0x6ac   :  { %2827 = vmatprep.subr.mxu0 %v3086_v24 }
 0x6ad   :  { %2828 = vmatpush3.msra.mxu0 %v3321_v58 }
 0x6ae   :  { %2843 = vmatprep.subr.mxu0 %v3086_v24 }
 0x75d   :  { %v1068_v25 = vpop.f32.mrf.mxu1 }
 0x75e   :  { %v1069_v26 = vadd.f32 %v3367_v5, %v1068_v25 }
 0x75f   :  { %v2798_v27 = vpop.f32.mrf.mxu1 }
 0x760   :  { %1080 = vrot.lane.b32.xlu0 %v1069_v26, %s3088_s5  ;;  %v1072_v32 = vadd.f32 %v1069_v26, %v996_v31 }
 0x762   :  { %v2514_v33 = vmul.f32 -1.442695, %v1072_v32  ;;  %v1230_v32 = vld [vmem:[#allocation2 + $0x18] sm:$0xff] }
 0x764   :  { %2979 = vpow2.f32 %v2514_v33 }
 0x766   :  { %v1171_v28 = vpop.f32.mrf.mxu0 }
 0x767   :  { %v1172_v29 = vadd.f32 %v3378_v17, %v1171_v28 }
 0x768   :  { %v2809_v30 = vpop.f32.mrf.mxu0 }
 0x769   :  { %1183 = vrot.lane.b32.xlu1 %v1172_v29, %s3088_s5  ;;  %v1175_v35 = vadd.f32 %v1172_v29, %v1099_v34 }
 0x76b   :  { %v2516_v36 = vmul.f32 -1.442695, %v1175_v35  ;;  %v1333_v35 = vld [vmem:[#allocation3 + $0x20] sm:$0xff] }
 0x76d   :  { %2981 = vpow2.f32 %v2516_v36 }
 0x771   :  { %v2980_v37 = vpop.eup %2979 }
 0x772   :  { %v1076_v38 = vadd.f32 1.0, %v2980_v37 }
 0x774   :  { %2983 = vrcp.f32 %v1076_v38 }
 0x77a   :  { %v2982_v39 = vpop.eup %2981 }
 0x77b   :  { %v1179_v40 = vadd.f32 1.0, %v2982_v39 }
 0x77d   :  { %2985 = vrcp.f32 %v1179_v40 }
 0x781   :  { %v2984_v41 = vpop.eup %2983 }
 0x782   :  { %v1090_v0 = vsub.f32 1.0, %v2984_v41  ;;  %v1096_v4 = vmul.f32 %v2984_v41, %v3477_v11 }
 0x78a   :  { %v2986_v51 = vpop.eup %2985 }
 0x78b   :  { %v1193_v13 = vsub.f32 1.0, %v2986_v51  ;;  %v1199_v19 = vmul.f32 %v2986_v51, %v3491_v16 }
 0x7d2   :  { %v1081_v43 = vpop.permute.xlu0 %1080 }
 0x7d3   :  { %v1083_v45 = vmul.f32 %v2984_v41, %v1081_v43 }
 0x7d5   :  { %1085 = vrot.lane.b32.xlu0 %v1083_v45, %s3088_s5 }
 0x7d9   :  { %1205 = vperm.xlu0 %2953, %v1203_v47  }
 0x7db   :  { %v1184_v52 = vpop.permute.xlu1 %1183 }
 0x7dc   :  { %v1186_v54 = vmul.f32 %v2986_v51, %v1184_v52  ;;  %v1449_v51 = vsel %vm1436_vm12, 1, %v3085_v2 }
 0x7dd   :  { %1217 = vperm.xlu0 %2953, %v1215_v49   ;;  %v1437_v49 = vsel %vm1435_vm9, 1, %v3085_v2 }
 0x7de   :  { %1188 = vrot.lane.b32.xlu1 %v1186_v54, %s3088_s5 }
 0x847   :  { %v1086_v57 = vpop.permute.xlu0 %1085 }
 0x848   :  { %v1088_v59 = vadd.f32 %v1086_v57, %v996_v31 }
 0x84a   :  { %2987 = vtanh.f32 %v1088_v59 }
 0x850   :  { %v1189_v60 = vpop.permute.xlu1 %1188 }
 0x851   :  { %v1191_v61 = vadd.f32 %v1189_v60, %v1099_v34 }
 0x853   :  { %2989 = vtanh.f32 %v1191_v61 }
 0x854   :  { %v3529_v3 = vpop.permute.xlu0 %1205 }
 0x855   :  { %vm1207_vm7 = vcmp.eq.s32.totalorder %v3529_v3, 1 }
 0x857   :  { %v2988_v62 = vpop.eup %2987 }
 0x858   :  { %1092 = vrot.lane.b32.xlu1 %v2988_v62, %s3089_s1  ;;  %v3543_v18 = vpop.permute.xlu0 %1217 }
 0x859   :  { %vm1219_vm8 = vcmp.eq.s32.totalorder %v3543_v18, 1 }
 0x860   :  { %v2990_v63 = vpop.eup %2989 }
 0x861   :  { %1195 = vrot.lane.b32.xlu1 %v2990_v63, %s3089_s1 }
 0x8ca   :  { %v1093_v1 = vpop.permute.xlu1 %1092 }
 0x8cb   :  { %v1095_v6 = vmul.f32 %v1093_v1, %v1090_v0 }
 0x8cd   :  { %v3532_v8 = vadd.f32 %v1096_v4, %v1095_v6 }
 0x8cf   :  { %v3539_v9 = vsel %vm1207_vm7, %v3532_v8, %v3477_v11 }
 0x8d0   :  { %1232 = vrot.lane.b32.xlu0 %v3539_v9, %s3089_s1 }
 0x8d3   :  { %v1196_v14 = vpop.permute.xlu1 %1195 }
 0x8d4   :  { %v1198_v22 = vmul.f32 %v1196_v14, %v1193_v13 }
 0x8d6   :  { %v3546_v23 = vadd.f32 %v1199_v19, %v1198_v22 }
 0x8d8   :  { %v3553_v11 = vsel %vm1219_vm8, %v3546_v23, %v3491_v16 }
 0x8d9   :  { %1335 = vrot.lane.b32.xlu1 %v3553_v11, %s3089_s1 }
 0x942   :  { %v1233_v25 = vpop.permute.xlu0 %1232 }
 0x943   :  { %2819 = vmatmul.mubr.msk.f32.vlgmr.msra.gmra.mxu1 %vm258_vm10, %v1233_v25 }
 0x944   :  { %2833 = vmatpush3.msra.mxu1 %v3253_v42  ;;  %2840 = vmatprep.mubr.msk.f32.mxu1 %vm3087_vm11, %v3086_v24 }
 0x945   :  { %2834 = vmatprep.subr.mxu1 %v3086_v24 }
 0x946   :  { %2835 = vmatpush3.msra.mxu1 %v3260_v44 }
 0x947   :  { %2836 = vmatprep.subr.mxu1 %v3086_v24 }
 0x948   :  { %2837 = vmatpush3.msra.mxu1 %v3267_v46 }
 0x949   :  { %2838 = vmatprep.subr.mxu1 %v3086_v24 }
 0x94a   :  { %2839 = vmatpush3.msra.mxu1 %v3276_v48 }
 0x94b   :  { %v1336_v16 = vpop.permute.xlu1 %1335  ;;  %2854 = vmatprep.subr.mxu1 %v3086_v24 }
 0x94c   :  { %2830 = vmatmul.mubr.msk.f32.vlgmr.msra.gmra.mxu0 %vm258_vm10, %v1336_v16 }
 0x94d   :  { %2844 = vmatpush3.msra.mxu0 %v3287_v50  ;;  %2851 = vmatprep.mubr.msk.f32.mxu0 %vm3087_vm11, %v3086_v24 }
 0x94e   :  { %2845 = vmatprep.subr.mxu0 %v3086_v24 }
 0x94f   :  { %2846 = vmatpush3.msra.mxu0 %v3298_v53 }
 0x950   :  { %2847 = vmatprep.subr.mxu0 %v3086_v24 }
 0x951   :  { %2848 = vmatpush3.msra.mxu0 %v3309_v56 }
 0x952   :  { %2849 = vmatprep.subr.mxu0 %v3086_v24 }
 0x953   :  { %2850 = vmatpush3.msra.mxu0 %v3321_v58 }
 0x954   :  { %2865 = vmatprep.subr.mxu0 %v3086_v24 }
 0xa03   :  { %v1302_v26 = vpop.f32.mrf.mxu1 }
 0xa04   :  { %v1303_v27 = vadd.f32 %v3367_v5, %v1302_v26 }
 0xa05   :  { %v2820_v28 = vpop.f32.mrf.mxu1 }
 0xa06   :  { %1314 = vrot.lane.b32.xlu0 %v1303_v27, %s3088_s5  ;;  %v1306_v33 = vadd.f32 %v1303_v27, %v1230_v32 }
 0xa08   :  { %v2520_v34 = vmul.f32 -1.442695, %v1306_v33 }
 0xa0a   :  { %2991 = vpow2.f32 %v2520_v34 }
 0xa0c   :  { %v1405_v29 = vpop.f32.mrf.mxu0 }
 0xa0d   :  { %v1406_v30 = vadd.f32 %v3378_v17, %v1405_v29  ;;  %v1464_v29 = vld [vmem:[#allocation2 + $0x20] sm:$0xff] }
 0xa0e   :  { %v2831_v31 = vpop.f32.mrf.mxu0 }
 0xa0f   :  { %1417 = vrot.lane.b32.xlu1 %v1406_v30, %s3088_s5  ;;  %v1409_v36 = vadd.f32 %v1406_v30, %v1333_v35  ;;  %v1567_v31 = vld [vmem:[#allocation3 + $0x18] sm:$0xff] }
 0xa11   :  { %v2522_v37 = vmul.f32 -1.442695, %v1409_v36 }
 0xa13   :  { %2993 = vpow2.f32 %v2522_v37 }
 0xa17   :  { %v2992_v38 = vpop.eup %2991 }
 0xa18   :  { %v1310_v39 = vadd.f32 1.0, %v2992_v38 }
 0xa1a   :  { %2995 = vrcp.f32 %v1310_v39 }
 0xa20   :  { %v2994_v40 = vpop.eup %2993 }
 0xa21   :  { %v1413_v41 = vadd.f32 1.0, %v2994_v40 }
 0xa23   :  { %2997 = vrcp.f32 %v1413_v41 }
 0xa27   :  { %v2996_v43 = vpop.eup %2995 }
 0xa28   :  { %v1324_v55 = vsub.f32 1.0, %v2996_v43  ;;  %v1330_v4 = vmul.f32 %v2996_v43, %v3539_v9 }
 0xa30   :  { %v2998_v52 = vpop.eup %2997 }
 0xa31   :  { %v1427_v19 = vsub.f32 1.0, %v2998_v52  ;;  %v1433_v16 = vmul.f32 %v2998_v52, %v3553_v11 }
 0xa78   :  { %v1315_v45 = vpop.permute.xlu0 %1314 }
 0xa79   :  { %v1317_v47 = vmul.f32 %v2996_v43, %v1315_v45 }
 0xa7b   :  { %1319 = vrot.lane.b32.xlu0 %v1317_v47, %s3088_s5 }
 0xa7f   :  { %1439 = vperm.xlu0 %2953, %v1437_v49  }
 0xa81   :  { %v1418_v54 = vpop.permute.xlu1 %1417 }
 0xa82   :  { %v1420_v57 = vmul.f32 %v2998_v52, %v1418_v54 }
 0xa83   :  { %1451 = vperm.xlu0 %2953, %v1449_v51  }
 0xa84   :  { %1422 = vrot.lane.b32.xlu1 %v1420_v57, %s3088_s5 }
 0xaed   :  { %v1320_v59 = vpop.permute.xlu0 %1319 }
 0xaee   :  { %v1322_v60 = vadd.f32 %v1320_v59, %v1230_v32 }
 0xaf0   :  { %2999 = vtanh.f32 %v1322_v60 }
 0xaf6   :  { %v1423_v61 = vpop.permute.xlu1 %1422 }
 0xaf7   :  { %v1425_v62 = vadd.f32 %v1423_v61, %v1333_v35 }
 0xaf9   :  { %3001 = vtanh.f32 %v1425_v62 }
 0xafa   :  { %v3591_v1 = vpop.permute.xlu0 %1439 }
 0xafb   :  { %vm1441_vm13 = vcmp.eq.s32.totalorder %v3591_v1, 1 }
 0xafd   :  { %v3000_v63 = vpop.eup %2999 }
 0xafe   :  { %1326 = vrot.lane.b32.xlu1 %v3000_v63, %s3089_s1  ;;  %v3605_v25 = vpop.permute.xlu0 %1451 }
 0xaff   :  { %vm1453_vm14 = vcmp.eq.s32.totalorder %v3605_v25, 1 }
 0xb06   :  { %v3002_v0 = vpop.eup %3001 }
 0xb07   :  { %1429 = vrot.lane.b32.xlu1 %v3002_v0, %s3089_s1 }
 0xb70   :  { %v1327_v2 = vpop.permute.xlu1 %1326 }
 0xb71   :  { %v1329_v6 = vmul.f32 %v1327_v2, %v1324_v55 }
 0xb73   :  { %v3594_v13 = vadd.f32 %v1330_v4, %v1329_v6 }
 0xb75   :  { %v3601_v14 = vsel %vm1441_vm13, %v3594_v13, %v3539_v9 }
 0xb76   :  { %1466 = vrot.lane.b32.xlu0 %v3601_v14, %s3089_s1 }
 0xb79   :  { %v1430_v22 = vpop.permute.xlu1 %1429 }
 0xb7a   :  { %v1432_v26 = vmul.f32 %v1430_v22, %v1427_v19  ;;  %v3675_v22 = vld [vmem:[%s3995_s4 + $0x18] sm:$0xff] }
 0xb7c   :  { %v3608_v27 = vadd.f32 %v1433_v16, %v1432_v26  ;;  %v3684_v16 = vld [vmem:[%s3995_s4 + $0x10] sm:$0xff]  ;;  %v3691_v26 = vld [vmem:[%s3995_s4 + $0x8] sm:$0xff] }
 0xb7e   :  { %v3615_v9 = vsel %vm1453_vm14, %v3608_v27, %v3553_v11  ;;  %v1454_v15 = vsel %vm1453_vm14, %v3608_v27, 0.0 }
 0xb7f   :  { %1569 = vrot.lane.b32.xlu1 %v3615_v9, %s3089_s1 }
 0xbe8   :  { %v1467_v28 = vpop.permute.xlu0 %1466 }
 0xbe9   :  { %2841 = vmatmul.mubr.msk.f32.vlgmr.msra.gmra.mxu1 %vm258_vm10, %v1467_v28 }
 0xbea   :  { %2855 = vmatpush3.msra.mxu1 %v3253_v42  ;;  %2862 = vmatprep.mubr.msk.f32.mxu1 %vm3087_vm11, %v3086_v24 }
 0xbeb   :  { %2856 = vmatprep.subr.mxu1 %v3086_v24 }
 0xbec   :  { %2857 = vmatpush3.msra.mxu1 %v3260_v44 }
 0xbed   :  { %2858 = vmatprep.subr.mxu1 %v3086_v24 }
 0xbee   :  { %2859 = vmatpush3.msra.mxu1 %v3267_v46 }
 0xbef   :  { %2860 = vmatprep.subr.mxu1 %v3086_v24 }
 0xbf0   :  { %2861 = vmatpush3.msra.mxu1 %v3276_v48 }
 0xbf1   :  { %v1570_v11 = vpop.permute.xlu1 %1569  ;;  %2876 = vmatprep.subr.mxu1 %v3086_v24 }
 0xbf2   :  { %2852 = vmatmul.mubr.msk.f32.vlgmr.msra.gmra.mxu0 %vm258_vm10, %v1570_v11  ;;  %v3706_v11 = vld [vmem:[%s3999_s8 + $0x18] sm:$0xff] }
 0xbf3   :  { %2866 = vmatpush3.msra.mxu0 %v3287_v50  ;;  %2873 = vmatprep.mubr.msk.f32.mxu0 %vm3087_vm11, %v3086_v24 }
 0xbf4   :  { %2867 = vmatprep.subr.mxu0 %v3086_v24 }
 0xbf5   :  { %2868 = vmatpush3.msra.mxu0 %v3298_v53 }
 0xbf6   :  { %2869 = vmatprep.subr.mxu0 %v3086_v24 }
 0xbf7   :  { %2870 = vmatpush3.msra.mxu0 %v3309_v56 }
 0xbf8   :  { %2871 = vmatprep.subr.mxu0 %v3086_v24 }
 0xbf9   :  { %2872 = vmatpush3.msra.mxu0 %v3321_v58 }
 0xbfa   :  { %2887 = vmatprep.subr.mxu0 %v3086_v24 }
 0xca9   :  { %v1536_v42 = vpop.f32.mrf.mxu1 }
 0xcaa   :  { %v1537_v44 = vadd.f32 %v3367_v5, %v1536_v42  ;;  %v3715_v42 = vld [vmem:[%s3999_s8 + $0x10] sm:$0xff] }
 0xcab   :  { %v2842_v46 = vpop.f32.mrf.mxu1 }
 0xcac   :  { %1548 = vrot.lane.b32.xlu0 %v1537_v44, %s3088_s5  ;;  %v1540_v56 = vadd.f32 %v1537_v44, %v1464_v29  ;;  %v3722_v44 = vld [vmem:[%s3999_s8 + $0x8] sm:$0xff]  ;;  %v3729_v46 = vld [vmem:[%s3999_s8] sm:$0xff] }
 0xcae   :  { %v2526_v30 = vmul.f32 -1.442695, %v1540_v56 }
 0xcb0   :  { %3003 = vpow2.f32 %v2526_v30 }
 0xcb2   :  { %v1639_v48 = vpop.f32.mrf.mxu0 }
 0xcb3   :  { %v1640_v50 = vadd.f32 %v3378_v17, %v1639_v48 }
 0xcb4   :  { %v2853_v53 = vpop.f32.mrf.mxu0 }
 0xcb5   :  { %1651 = vrot.lane.b32.xlu1 %v1640_v50, %s3088_s5  ;;  %v1643_v58 = vadd.f32 %v1640_v50, %v1567_v31 }
 0xcb7   :  { %v2528_v32 = vmul.f32 -1.442695, %v1643_v58 }
 0xcb9   :  { %3005 = vpow2.f32 %v2528_v32 }
 0xcbd   :  { %v3004_v33 = vpop.eup %3003 }
 0xcbe   :  { %v1544_v34 = vadd.f32 1.0, %v3004_v33  ;;  %v1789_v33 = vld [vmem:[#allocation3 + $0x10] sm:$0xff] }
 0xcc0   :  { %3007 = vrcp.f32 %v1544_v34 }
 0xcc6   :  { %v3006_v35 = vpop.eup %3005 }
 0xcc7   :  { %v1647_v36 = vadd.f32 1.0, %v3006_v35 }
 0xcc9   :  { %3009 = vrcp.f32 %v1647_v36 }
 0xccd   :  { %v3008_v37 = vpop.eup %3007 }
 0xcce   :  { %v1558_v57 = vsub.f32 1.0, %v3008_v37  ;;  %v1564_v60 = vmul.f32 %v3008_v37, %v3601_v14 }
 0xcd6   :  { %v3010_v40 = vpop.eup %3009 }
 0xcd7   :  { %v1661_v0 = vsub.f32 1.0, %v3010_v40  ;;  %v1667_v2 = vmul.f32 %v3010_v40, %v3615_v9 }
 0xd1e   :  { %v1549_v38 = vpop.permute.xlu0 %1548 }
 0xd1f   :  { %v1551_v39 = vmul.f32 %v3008_v37, %v1549_v38 }
 0xd21   :  { %1553 = vrot.lane.b32.xlu0 %v1551_v39, %s3088_s5 }
 0xd27   :  { %v1652_v41 = vpop.permute.xlu1 %1651 }
 0xd28   :  { %v1654_v43 = vmul.f32 %v3010_v40, %v1652_v41 }
 0xd2a   :  { %1656 = vrot.lane.b32.xlu1 %v1654_v43, %s3088_s5 }
 0xd93   :  { %v1554_v45 = vpop.permute.xlu0 %1553 }
 0xd94   :  { %v1556_v47 = vadd.f32 %v1554_v45, %v1464_v29 }
 0xd96   :  { %3011 = vtanh.f32 %v1556_v47 }
 0xd9c   :  { %v1657_v49 = vpop.permute.xlu1 %1656 }
 0xd9d   :  { %v1659_v51 = vadd.f32 %v1657_v49, %v1567_v31  ;;  %v1686_v31 = vld [vmem:[#allocation2 + $0x28] sm:$0xff] }
 0xd9f   :  { %3013 = vtanh.f32 %v1659_v51 }
 0xda3   :  { %v3012_v52 = vpop.eup %3011 }
 0xda4   :  { %1560 = vrot.lane.b32.xlu0 %v3012_v52, %s3089_s1 }
 0xdac   :  { %v3014_v54 = vpop.eup %3013 }
 0xdad   :  { %1663 = vrot.lane.b32.xlu1 %v3014_v54, %s3089_s1 }
 0xe16   :  { %v1561_v59 = vpop.permute.xlu0 %1560 }
 0xe17   :  { %v1563_v61 = vmul.f32 %v1561_v59, %v1558_v57 }
 0xe19   :  { %v3650_v62 = vadd.f32 %v1564_v60, %v1563_v61 }
 0xe1b   :  { %v3656_v63 = vsel %vm1453_vm14, %v3650_v62, %v3601_v14 }
 0xe1c   :  { %1688 = vrot.lane.b32.xlu0 %v3656_v63, %s3089_s1 }
 0xe1f   :  { %v1664_v55 = vpop.permute.xlu1 %1663 }
 0xe20   :  { %v1666_v4 = vmul.f32 %v1664_v55, %v1661_v0 }
 0xe22   :  { %v3661_v6 = vadd.f32 %v1667_v2, %v1666_v4 }
 0xe24   :  { %v3667_v19 = vsel %vm1441_vm13, %v3661_v6, %v3615_v9  ;;  %v3698_v9 = vld [vmem:[%s3995_s4] sm:$0xff]  ;;  %v1676_v18 = vsel %vm1441_vm13, %v3661_v6, 0.0 }
 0xe25   :  { %1791 = vrot.lane.b32.xlu1 %v3667_v19, %s3089_s1 }
 0xe8e   :  { %v1689_v14 = vpop.permute.xlu0 %1688 }
 0xe8f   :  { %2863 = vmatmul.mubr.msk.f32.vlgmr.msra.gmra.mxu1 %vm258_vm10, %v1689_v14 }
 0xe90   :  { %2877 = vmatpush3.msra.mxu1 %v3675_v22  ;;  %2884 = vmatprep.mubr.msk.f32.mxu1 %vm3087_vm11, %v3086_v24 }
 0xe91   :  { %2878 = vmatprep.subr.mxu1 %v3086_v24 }
 0xe92   :  { %2879 = vmatpush3.msra.mxu1 %v3684_v16 }
 0xe93   :  { %2880 = vmatprep.subr.mxu1 %v3086_v24 }
 0xe94   :  { %2881 = vmatpush3.msra.mxu1 %v3691_v26 }
 0xe95   :  { %2882 = vmatprep.subr.mxu1 %v3086_v24 }
 0xe96   :  { %2883 = vmatpush3.msra.mxu1 %v3698_v9 }
 0xe97   :  { %v1792_v28 = vpop.permute.xlu1 %1791  ;;  %2898 = vmatprep.subr.mxu1 %v3086_v24 }
 0xe98   :  { %2874 = vmatmul.mubr.msk.f32.vlgmr.msra.gmra.mxu0 %vm258_vm10, %v1792_v28 }
 0xe99   :  { %2888 = vmatpush3.msra.mxu0 %v3706_v11  ;;  %2895 = vmatprep.mubr.msk.f32.mxu0 %vm3087_vm11, %v3086_v24 }
 0xe9a   :  { %2889 = vmatprep.subr.mxu0 %v3086_v24 }
 0xe9b   :  { %2890 = vmatpush3.msra.mxu0 %v3715_v42 }
 0xe9c   :  { %2891 = vmatprep.subr.mxu0 %v3086_v24 }
 0xe9d   :  { %2892 = vmatpush3.msra.mxu0 %v3722_v44 }
 0xe9e   :  { %2893 = vmatprep.subr.mxu0 %v3086_v24 }
 0xe9f   :  { %2894 = vmatpush3.msra.mxu0 %v3729_v46 }
 0xea0   :  { %2909 = vmatprep.subr.mxu0 %v3086_v24 }
 0xf4f   :  { %v1758_v48 = vpop.f32.mrf.mxu1 }
 0xf50   :  { %v1759_v50 = vadd.f32 %v3367_v5, %v1758_v48 }
 0xf51   :  { %v2864_v53 = vpop.f32.mrf.mxu1 }
 0xf52   :  { %1770 = vrot.lane.b32.xlu0 %v1759_v50, %s3088_s5  ;;  %v1762_v58 = vadd.f32 %v1759_v50, %v1686_v31 }
 0xf54   :  { %v2532_v32 = vmul.f32 -1.442695, %v1762_v58 }
 0xf56   :  { %3015 = vpow2.f32 %v2532_v32 }
 0xf58   :  { %v1861_v29 = vpop.f32.mrf.mxu0 }
 0xf59   :  { %v1862_v56 = vadd.f32 %v3378_v17, %v1861_v29 }
 0xf5a   :  { %v2875_v30 = vpop.f32.mrf.mxu0 }
 0xf5b   :  { %1873 = vrot.lane.b32.xlu1 %v1862_v56, %s3088_s5  ;;  %v1865_v34 = vadd.f32 %v1862_v56, %v1789_v33  ;;  %v1908_v56 = vld [vmem:[#allocation2 + $0x30] sm:$0xff] }
 0xf5d   :  { %v2534_v35 = vmul.f32 -1.442695, %v1865_v34 }
 0xf5f   :  { %3017 = vpow2.f32 %v2534_v35 }
 0xf63   :  { %v3016_v36 = vpop.eup %3015 }
 0xf64   :  { %v1766_v37 = vadd.f32 1.0, %v3016_v36 }
 0xf66   :  { %3019 = vrcp.f32 %v1766_v37 }
 0xf6c   :  { %v3018_v5 = vpop.eup %3017 }
 0xf6d   :  { %v1869_v38 = vadd.f32 1.0, %v3018_v5 }
 0xf6f   :  { %3021 = vrcp.f32 %v1869_v38 }
 0xf73   :  { %v3020_v39 = vpop.eup %3019 }
 0xf74   :  { %v1780_v59 = vsub.f32 1.0, %v3020_v39  ;;  %v1786_v61 = vmul.f32 %v3020_v39, %v3656_v63 }
 0xf7c   :  { %v3022_v41 = vpop.eup %3021 }
 0xf7d   :  { %v1883_v4 = vsub.f32 1.0, %v3022_v41  ;;  %v1889_v28 = vmul.f32 %v3022_v41, %v3667_v19 }
 0xfc4   :  { %v1771_v40 = vpop.permute.xlu0 %1770 }
 0xfc5   :  { %v1773_v17 = vmul.f32 %v3020_v39, %v1771_v40 }
 0xfc7   :  { %1775 = vrot.lane.b32.xlu0 %v1773_v17, %s3088_s5 }
 0xfcd   :  { %v1874_v43 = vpop.permute.xlu1 %1873 }
 0xfce   :  { %v1876_v45 = vmul.f32 %v3022_v41, %v1874_v43 }
 0xfd0   :  { %1878 = vrot.lane.b32.xlu1 %v1876_v45, %s3088_s5 }
0x1039   :  { %v1776_v47 = vpop.permute.xlu0 %1775 }
0x103a   :  { %v1778_v49 = vadd.f32 %v1776_v47, %v1686_v31  ;;  %v2011_v31 = vld [vmem:[#allocation3 + $0x8] sm:$0xff] }
0x103c   :  { %3023 = vtanh.f32 %v1778_v49 }
0x1042   :  { %v1879_v51 = vpop.permute.xlu1 %1878 }
0x1043   :  { %v1881_v52 = vadd.f32 %v1879_v51, %v1789_v33 }
0x1045   :  { %3025 = vtanh.f32 %v1881_v52 }
0x1049   :  { %v3024_v54 = vpop.eup %3023 }
0x104a   :  { %1782 = vrot.lane.b32.xlu0 %v3024_v54, %s3089_s1 }
0x1052   :  { %v3026_v57 = vpop.eup %3025 }
0x1053   :  { %1885 = vrot.lane.b32.xlu1 %v3026_v57, %s3089_s1 }
0x10bc   :  { %v1783_v60 = vpop.permute.xlu0 %1782 }
0x10bd   :  { %v1785_v0 = vmul.f32 %v1783_v60, %v1780_v59 }
0x10bf   :  { %v3742_v55 = vadd.f32 %v1786_v61, %v1785_v0 }
0x10c1   :  { %v3748_v2 = vsel %vm1219_vm8, %v3742_v55, %v3656_v63 }
0x10c2   :  { %1910 = vrot.lane.b32.xlu0 %v3748_v2, %s3089_s1 }
0x10c5   :  { %v1886_v14 = vpop.permute.xlu1 %1885 }
0x10c6   :  { %v1888_v48 = vmul.f32 %v1886_v14, %v1883_v4 }
0x10c8   :  { %v3753_v50 = vadd.f32 %v1889_v28, %v1888_v48 }
0x10ca   :  { %v3759_v53 = vsel %vm1207_vm7, %v3753_v50, %v3667_v19 }
0x10cb   :  { %2013 = vrot.lane.b32.xlu1 %v3759_v53, %s3089_s1 }
0x1134   :  { %v1911_v63 = vpop.permute.xlu0 %1910 }
0x1135   :  { %2885 = vmatmul.mubr.msk.f32.vlgmr.msra.gmra.mxu1 %vm258_vm10, %v1911_v63 }
0x1136   :  { %2899 = vmatpush3.msra.mxu1 %v3675_v22  ;;  %2906 = vmatprep.mubr.msk.f32.mxu1 %vm3087_vm11, %v3086_v24 }
0x1137   :  { %2900 = vmatprep.subr.mxu1 %v3086_v24 }
0x1138   :  { %2901 = vmatpush3.msra.mxu1 %v3684_v16  ;;  %v3061_v16 = vld [vmem:[%s3997_s6] ss:$0 sm:$0xff] }
0x1139   :  { %2902 = vmatprep.subr.mxu1 %v3086_v24 }
0x113a   :  { %2903 = vmatpush3.msra.mxu1 %v3691_v26 }
0x113b   :  { %2904 = vmatprep.subr.mxu1 %v3086_v24 }
0x113c   :  { %2905 = vmatpush3.msra.mxu1 %v3698_v9 }
0x113d   :  { %v2014_v19 = vpop.permute.xlu1 %2013  ;;  %2920 = vmatprep.subr.mxu1 %v3086_v24 }
0x113e   :  { %2896 = vmatmul.mubr.msk.f32.vlgmr.msra.gmra.mxu0 %vm258_vm10, %v2014_v19 }
0x113f   :  { %2910 = vmatpush3.msra.mxu0 %v3706_v11  ;;  %2917 = vmatprep.mubr.msk.f32.mxu0 %vm3087_vm11, %v3086_v24 }
0x1140   :  { %2911 = vmatprep.subr.mxu0 %v3086_v24 }
0x1141   :  { %2912 = vmatpush3.msra.mxu0 %v3715_v42  ;;  %v3062_v42 = vld [vmem:[%s4001_s10] ss:$0 sm:$0xff] }
0x1142   :  { %2913 = vmatprep.subr.mxu0 %v3086_v24 }
0x1143   :  { %2914 = vmatpush3.msra.mxu0 %v3722_v44 }
0x1144   :  { %2915 = vmatprep.subr.mxu0 %v3086_v24 }
0x1145   :  { %2916 = vmatpush3.msra.mxu0 %v3729_v46 }
0x11f5   :  { %v1980_v22 = vpop.f32.mrf.mxu1 }
0x11f6   :  { %v1981_v26 = vadd.f32 %v3061_v16, %v1980_v22 }
0x11f7   :  { %v2886_v9 = vpop.f32.mrf.mxu1 }
0x11f8   :  { %1992 = vrot.lane.b32.xlu0 %v1981_v26, %s3088_s5  ;;  %v1984_v46 = vadd.f32 %v1981_v26, %v1908_v56 }
0x11fa   :  { %v2538_v30 = vmul.f32 -1.442695, %v1984_v46 }
0x11fc   :  { %3027 = vpow2.f32 %v2538_v30  ;;  %v2232_v30 = vld [vmem:[#allocation3] sm:$0xff] }
0x11fe   :  { %v2083_v11 = vpop.f32.mrf.mxu0 }
0x11ff   :  { %v2084_v29 = vadd.f32 %v3062_v42, %v2083_v11 }
0x1200   :  { %v2897_v44 = vpop.f32.mrf.mxu0 }
0x1201   :  { %2095 = vrot.lane.b32.xlu1 %v2084_v29, %s3088_s5  ;;  %v2087_v58 = vadd.f32 %v2084_v29, %v2011_v31  ;;  %v2130_v44 = vld [vmem:[#allocation2 + $0x38] sm:$0xff] }
0x1203   :  { %v2540_v32 = vmul.f32 -1.442695, %v2087_v58 }
0x1205   :  { %3029 = vpow2.f32 %v2540_v32 }
0x1209   :  { %v3028_v33 = vpop.eup %3027 }
0x120a   :  { %v1988_v34 = vadd.f32 1.0, %v3028_v33 }
0x120c   :  { %3031 = vrcp.f32 %v1988_v34 }
0x1212   :  { %v3030_v35 = vpop.eup %3029 }
0x1213   :  { %v2091_v36 = vadd.f32 1.0, %v3030_v35 }
0x1215   :  { %3033 = vrcp.f32 %v2091_v36 }
0x1219   :  { %v3032_v37 = vpop.eup %3031 }
0x121a   :  { %v2002_v52 = vsub.f32 1.0, %v3032_v37  ;;  %v2008_v57 = vmul.f32 %v3032_v37, %v3748_v2 }
0x1222   :  { %v3034_v39 = vpop.eup %3033 }
0x1223   :  { %v2105_v0 = vsub.f32 1.0, %v3034_v39  ;;  %v2111_v14 = vmul.f32 %v3034_v39, %v3759_v53 }
0x126a   :  { %v1993_v5 = vpop.permute.xlu0 %1992 }
0x126b   :  { %v1995_v38 = vmul.f32 %v3032_v37, %v1993_v5 }
0x126d   :  { %1997 = vrot.lane.b32.xlu0 %v1995_v38, %s3088_s5 }
0x1273   :  { %v2096_v40 = vpop.permute.xlu1 %2095 }
0x1274   :  { %v2098_v17 = vmul.f32 %v3034_v39, %v2096_v40 }
0x1276   :  { %2100 = vrot.lane.b32.xlu1 %v2098_v17, %s3088_s5 }
0x12df   :  { %v1998_v41 = vpop.permute.xlu0 %1997 }
0x12e0   :  { %v2000_v43 = vadd.f32 %v1998_v41, %v1908_v56 }
0x12e2   :  { %3035 = vtanh.f32 %v2000_v43 }
0x12e8   :  { %v2101_v45 = vpop.permute.xlu1 %2100 }
0x12e9   :  { %v2103_v47 = vadd.f32 %v2101_v45, %v2011_v31 }
0x12eb   :  { %3037 = vtanh.f32 %v2103_v47  ;;  %v974_v47 = vsel %vm973_vm3, %v3470_v10, 0.0  ;;  %v2360_v10 = vld [vmem:[%s4002_s11 + $0x30] sm:$0xff] }
0x12ef   :  { %v3036_v49 = vpop.eup %3035 }
0x12f0   :  { %2004 = vrot.lane.b32.xlu0 %v3036_v49, %s3089_s1  ;;  %v1208_v49 = vsel %vm1207_vm7, %v3532_v8, 0.0  ;;  %v2359_v8 = vld [vmem:[%s4002_s11 + $0x28] sm:$0xff] }
0x12f8   :  { %v3038_v51 = vpop.eup %3037 }
0x12f9   :  { %2107 = vrot.lane.b32.xlu1 %v3038_v51, %s3089_s1  ;;  %v1442_v51 = vsel %vm1441_vm13, %v3594_v13, 0.0  ;;  %v1669_v13 = vsel %vm1453_vm14, %v3650_v62, 0.0  ;;  %v1891_v62 = vsel %vm1219_vm8, %v3742_v55, 0.0 }
0x1362   :  { %v2005_v54 = vpop.permute.xlu0 %2004 }
0x1363   :  { %v2007_v59 = vmul.f32 %v2005_v54, %v2002_v52  ;;  %v2361_v52 = vld [vmem:[%s4002_s11 + $0x38] sm:$0xff]  ;;  %v2358_v54 = vld [vmem:[%s4002_s11 + $0x20] sm:$0xff] }
0x1365   :  { %v3797_v60 = vadd.f32 %v2008_v57, %v2007_v59  ;;  %v2357_v57 = vld [vmem:[%s4002_s11 + $0x18] sm:$0xff]  ;;  %v2356_v59 = vld [vmem:[%s4002_s11 + $0x10] sm:$0xff] }
0x1367   :  { %v3803_v61 = vsel %vm985_vm4, %v3797_v60, %v3748_v2  ;;  %v2113_v55 = vsel %vm985_vm4, %v3797_v60, 0.0 }
0x1368   :  { %2132 = vrot.lane.b32.xlu0 %v3803_v61, %s3089_s1 }
0x136b   :  { %v2108_v4 = vpop.permute.xlu1 %2107 }
0x136c   :  { %v2110_v28 = vmul.f32 %v2108_v4, %v2105_v0  ;;  %v2355_v0 = vld [vmem:[%s4002_s11 + $0x8] sm:$0xff]  ;;  %v2354_v4 = vld [vmem:[%s4002_s11] sm:$0xff] }
0x136e   :  { %v3808_v48 = vadd.f32 %v2111_v14, %v2110_v28 }
0x1370   :  { %v3814_v63 = vsel %vm973_vm3, %v3808_v48, %v3759_v53 }
0x1371   :  { %2234 = vrot.lane.b32.xlu1 %v3814_v63, %s3089_s1 }
0x13da   :  { %v2133_v2 = vpop.permute.xlu0 %2132 }
0x13db   :  { %2907 = vmatmul.mubr.msk.f32.vlgmr.msra.gmra.mxu1 %vm258_vm10, %v2133_v2 }
0x13dc   :  { %2936 = vmatprep.mubr.msk.f32.mxu1 %vm3087_vm11, %v3086_v24  ;;  %2921 = vmatpush3.msra.mxu1 %v2361_v52  ;;  %vm2369_vm11 = vcmask 523264  }
0x13dd   :  { %2922 = vmatprep.subr.mxu1 %v3086_v24 }
0x13de   :  { %2923 = vmatpush3.msra.mxu1 %v2360_v10 }
0x13df   :  { %2924 = vmatprep.subr.mxu1 %v3086_v24 }
0x13e0   :  { %2925 = vmatpush3.msra.mxu1 %v2359_v8 }
0x13e1   :  { %2926 = vmatprep.subr.mxu1 %v3086_v24 }
0x13e2   :  { %2927 = vmatpush3.msra.mxu1 %v2358_v54 }
0x13e3   :  { %v2235_v19 = vpop.permute.xlu1 %2234  ;;  %2928 = vmatprep.subr.mxu1 %v3086_v24 }
0x13e4   :  { %2918 = vmatmul.mubr.msk.f32.vlgmr.msra.gmra.mxu0 %vm258_vm10, %v2235_v19  ;;  %2929 = vmatpush3.msra.mxu1 %v2357_v57 }
0x13e5   :  { %2930 = vmatprep.subr.mxu1 %v3086_v24 }
0x13e6   :  { %2931 = vmatpush3.msra.mxu1 %v2356_v59 }
0x13e7   :  { %2932 = vmatprep.subr.mxu1 %v3086_v24 }
0x13e8   :  { %2933 = vmatpush3.msra.mxu1 %v2355_v0 }
0x13e9   :  { %2934 = vmatprep.subr.mxu1 %v3086_v24 }
0x13ea   :  { %2935 = vmatpush3.msra.mxu1 %v2354_v4 }
0x149b   :  { %v2202_v22 = vpop.f32.mrf.mxu1 }
0x149c   :  { %v2203_v26 = vadd.f32 %v3061_v16, %v2202_v22 }
0x149d   :  { %v2908_v9 = vpop.f32.mrf.mxu1 }
0x149e   :  { %2214 = vrot.lane.b32.xlu0 %v2203_v26, %s3088_s5  ;;  %v2206_v56 = vadd.f32 %v2203_v26, %v2130_v44  ;;  %v986_v9 = vsel %vm985_vm4, %v3484_v21, 0.0 }
0x14a0   :  { %v2544_v46 = vmul.f32 -1.442695, %v2206_v56 }
0x14a2   :  { %3039 = vpow2.f32 %v2544_v46 }
0x14a4   :  { %v2304_v11 = vpop.f32.mrf.mxu0 }
0x14a5   :  { %v2305_v53 = vadd.f32 %v3062_v42, %v2304_v11 }
0x14a6   :  { %v2919_v29 = vpop.f32.mrf.mxu0 }
0x14a7   :  { %2316 = vrot.lane.b32.xlu1 %v2305_v53, %s3088_s5  ;;  %v2308_v31 = vadd.f32 %v2305_v53, %v2232_v30  ;;  %v1220_v53 = vsel %vm1219_vm8, %v3546_v23, 0.0 }
0x14a9   :  { %v2546_v58 = vmul.f32 -1.442695, %v2308_v31 }
0x14ab   :  { %3041 = vpow2.f32 %v2546_v58 }
0x14af   :  { %v3040_v32 = vpop.eup %3039 }
0x14b0   :  { %v2210_v33 = vadd.f32 1.0, %v3040_v32 }
0x14b2   :  { %3043 = vrcp.f32 %v2210_v33 }
0x14b8   :  { %v3042_v16 = vpop.eup %3041 }
0x14b9   :  { %v2312_v34 = vadd.f32 1.0, %v3042_v16  ;;  %v2548_v16 = vld [vmem:[%s4003_s12] ss:$0 sm:$0xff] }
0x14bb   :  { %3045 = vrcp.f32 %v2312_v34 }
0x14bf   :  { %v3044_v35 = vpop.eup %3043 }
0x14c0   :  { %v2224_v14 = vsub.f32 1.0, %v3044_v35  ;;  %v2230_v2 = vmul.f32 %v3044_v35, %v3803_v61 }
0x14c8   :  { %v3825_v37 = vpop.eup %3045 }
0x14c9   :  { %v2326_v23 = vsub.f32 1.0, %v3825_v37  ;;  %v2332_v1 = vmul.f32 %v3825_v37, %v3814_v63 }
0x1510   :  { %v2215_v36 = vpop.permute.xlu0 %2214 }
0x1511   :  { %v2217_v42 = vmul.f32 %v3044_v35, %v2215_v36 }
0x1513   :  { %2219 = vrot.lane.b32.xlu0 %v2217_v42, %s3088_s5 }
0x1519   :  { %v2317_v5 = vpop.permute.xlu1 %2316 }
0x151a   :  { %v2319_v38 = vmul.f32 %v3825_v37, %v2317_v5 }
0x151c   :  { %2321 = vrot.lane.b32.xlu1 %v2319_v38, %s3088_s5 }
0x1585   :  { %v2220_v39 = vpop.permute.xlu0 %2219 }
0x1586   :  { %v2222_v40 = vadd.f32 %v2220_v39, %v2130_v44  ;;  %v2120_v44 = vsel %vm973_vm3, %v3808_v48, 0.0 }
0x1588   :  { %3047 = vtanh.f32 %v2222_v40 }
0x158e   :  { %v2322_v17 = vpop.permute.xlu1 %2321 }
0x158f   :  { %v2324_v41 = vadd.f32 %v2322_v17, %v2232_v30 }
0x1591   :  { %3049 = vtanh.f32 %v2324_v41 }
0x1595   :  { %v3048_v43 = vpop.eup %3047 }
0x1596   :  { %2226 = vrot.lane.b32.xlu0 %v3048_v43, %s3089_s1 }
0x159e   :  { %v3050_v45 = vpop.eup %3049 }
0x159f   :  { %2328 = vrot.lane.b32.xlu1 %v3050_v45, %s3089_s1 }
0x15a3   :  { %976 = vrot.lane.b32.xlu1 %v974_v47, %s3089_s1 }
0x15a7   :  { %1210 = vrot.lane.b32.xlu1 %v1208_v49, %s3089_s1 }
0x15ab   :  { %1444 = vrot.lane.b32.xlu1 %v1442_v51, %s3089_s1 }
0x15af   :  { %1671 = vrot.lane.b32.xlu1 %v1669_v13, %s3089_s1 }
0x15b3   :  { %1893 = vrot.lane.b32.xlu1 %v1891_v62, %s3089_s1 }
0x15b7   :  { %2115 = vrot.lane.b32.xlu1 %v2113_v55, %s3089_s1 }
0x1608   :  { %v2227_v28 = vpop.permute.xlu0 %2226 }
0x1609   :  { %v2229_v19 = vmul.f32 %v2227_v28, %v2224_v14 }
0x160b   :  { %v2231_v22 = vadd.f32 %v2230_v2, %v2229_v19 }
0x160d   :  { %v2347_v60 = vsel %vm759_vm0, %v2231_v22, %v3803_v61  ;;  %v2334_v26 = vsel %vm759_vm0, %v2231_v22, 0.0  ;;  %v1898_v61 = vsel %vm1207_vm7, %v3753_v50, 0.0 }
0x160e   :  { %2350 = vrot.lane.b32.xlu0 %v2347_v60, %s3089_s1  ;;  %2336 = vrot.lane.b32.xlu1 %v2334_v26, %s3089_s1 }
0x1611   :  { %v2329_v24 = vpop.permute.xlu1 %2328 }
0x1612   :  { %988 = vrot.lane.b32.xlu0 %v986_v9, %s3089_s1  ;;  %v2331_v25 = vmul.f32 %v2329_v24, %v2326_v23 }
0x1614   :  { %v2333_v6 = vadd.f32 %v2332_v1, %v2331_v25 }
0x1615   :  { %v977_v11 = vpop.permute.xlu1 %976 }
0x1616   :  { %2511 = vst.msk [vmem:[%s4004_s13 + $0x8] sm:$0xff] %vm258_vm10, %v977_v11  ;;  %1222 = vrot.lane.b32.xlu0 %v1220_v53, %s3089_s1  ;;  %v2341_v50 = vsel %vm748_vm15, %v2333_v6, 0.0  ;;  %v2348_v7 = vsel %vm748_vm15, %v2333_v6, %v3814_v63 }
0x1619   :  { %v1211_v20 = vpop.permute.xlu1 %1210 }
0x161a   :  { %2517 = vst.msk [vmem:[%s4004_s13 + $0x10] sm:$0xff] %vm258_vm10, %v1211_v20  ;;  %1456 = vrot.lane.b32.xlu0 %v1454_v15, %s3089_s1 }
0x161d   :  { %v1445_v21 = vpop.permute.xlu1 %1444 }
0x161e   :  { %2523 = vst.msk [vmem:[%s4004_s13 + $0x18] sm:$0xff] %vm258_vm10, %v1445_v21  ;;  %1678 = vrot.lane.b32.xlu0 %v1676_v18, %s3089_s1 }
0x1621   :  { %v1672_v27 = vpop.permute.xlu1 %1671 }
0x1622   :  { %2529 = vst.msk [vmem:[%s4004_s13 + $0x20] sm:$0xff] %vm258_vm10, %v1672_v27  ;;  %1900 = vrot.lane.b32.xlu0 %v1898_v61, %s3089_s1 }
0x1625   :  { %v1894_v29 = vpop.permute.xlu1 %1893 }
0x1626   :  { %2535 = vst.msk [vmem:[%s4004_s13 + $0x28] sm:$0xff] %vm258_vm10, %v1894_v29  ;;  %2122 = vrot.lane.b32.xlu0 %v2120_v44, %s3089_s1 }
0x1629   :  { %v2116_v3 = vpop.permute.xlu1 %2115 }
0x162a   :  { %2541 = vst.msk [vmem:[%s4004_s13 + $0x30] sm:$0xff] %vm258_vm10, %v2116_v3  ;;  %2343 = vrot.lane.b32.xlu0 %v2341_v50, %s3089_s1 }
0x1680   :  { %v2351_v48 = vpop.permute.xlu0 %2350  ;;  %v2337_v56 = vpop.permute.xlu1 %2336 }
0x1681   :  { %v2353_v46 = vsel %vm258_vm10, %v2351_v48, %v2348_v7  ;;  %2547 = vst.msk [vmem:[%s4004_s13 + $0x38] sm:$0xff] %vm258_vm10, %v2337_v56 }
0x1682   :  { %2937 = vmatmul.mubr.msk.f32.vlgmr.msra.gmra.mxu1 %vm2369_vm11, %v2353_v46 }
0x1684   :  { %v989_v30 = vpop.permute.xlu0 %988 }
0x1685   :  { %2512 = vst.msk [vmem:[%s4005_s14 + $0x30] sm:$0xff] %vm258_vm10, %v989_v30 }
0x1688   :  { %v1223_v31 = vpop.permute.xlu0 %1222 }
0x1689   :  { %2518 = vst.msk [vmem:[%s4005_s14 + $0x28] sm:$0xff] %vm258_vm10, %v1223_v31 }
0x168c   :  { %v1457_v12 = vpop.permute.xlu0 %1456 }
0x168d   :  { %2524 = vst.msk [vmem:[%s4005_s14 + $0x20] sm:$0xff] %vm258_vm10, %v1457_v12 }
0x1690   :  { %v1679_v63 = vpop.permute.xlu0 %1678 }
0x1691   :  { %2530 = vst.msk [vmem:[%s4005_s14 + $0x18] sm:$0xff] %vm258_vm10, %v1679_v63 }
0x1694   :  { %v1901_v58 = vpop.permute.xlu0 %1900 }
0x1695   :  { %2536 = vst.msk [vmem:[%s4005_s14 + $0x10] sm:$0xff] %vm258_vm10, %v1901_v58 }
0x1698   :  { %v2123_v32 = vpop.permute.xlu0 %2122 }
0x1699   :  { %2542 = vst.msk [vmem:[%s4005_s14 + $0x8] sm:$0xff] %vm258_vm10, %v2123_v32 }
0x169c   :  { %v2344_v33 = vpop.permute.xlu0 %2343 }
0x169d   :  { %2346 = vst.msk [vmem:[%s4005_s14] sm:$0xff] %vm258_vm10, %v2344_v33 }
0x1742   :  { %v2439_v34 = vpop.f32.mrf.mxu1 }
0x1743   :  { %v2440_v35 = vadd.f32 %v2548_v16, %v2439_v34 }
0x1744   :  { %v2938_v36 = vpop.f32.mrf.mxu1 }
0x1745   :  { %3051 = vtanh.f32 %v2440_v35 }
0x1752   :  { %v3052_v42 = vpop.eup %3051 }
0x1753   :  { %2444 = vst.msk [vmem:[#allocation4] sm:$0xff] %vm258_vm10, %v3052_v42 }
0x1754   :  { %3074 = shalt.err (!%p3071_p4)
}
0x1755   :  { %2458 = dma.vmem_to_hbm [thread:$0]  %s2456_s19, 128, %s4006_s15, [#allocation5]  }
0x1756   :  { %3083 = dma.done.wait [#allocation5], 128  }
0x1757   :  { %3084 = vsyncadd [#allocation5], 4294967168 }
0x1758   :  { %2466 = vsyncpa [#allocation5], 1 }

</bundles_post_ra>
